<compile_context>
chip_gen: v7x
topology: tpu7x:2x2x1
jax: 0.10.0
libtpu: 0.0.40
codegen_flags: <defaults>
</compile_context>

<pallas_src>
import functools

import jax
import jax.numpy as jnp
from jax.experimental import pallas as pl
from jax.experimental.pallas import tpu as pltpu


# ----------------------------- Pallas kernel ---------------------------------

def patch_split_kernel(x_ref, g_ref, b_ref, w_ref, wb_ref, o_ref, *, eps):
    """Fused LayerNorm + Linear(C -> 4F) + 2x2 pixel-shuffle for Gblk token maps.

    x_ref : (Gblk, H*W, C)
    o_ref : (Gblk, H, 2, W, 2F)   with  o[g,h,p,w,q*F+f] = y[(g,h,w), p*2F+q*F+f]
    """
    gblk, hw, c = x_ref.shape
    _, h, _, w, twof = o_ref.shape            # twof = 2 * fpn_dim

    # (Gblk, H*W, C) -> (Gblk*H*W, C): leading-dim merge, lane dim unchanged (free).
    x = x_ref[...].reshape(gblk * hw, c).astype(jnp.float32)

    # LayerNorm over channels (fp32 vector math).
    mu = jnp.mean(x, axis=-1, keepdims=True)
    var = jnp.mean((x - mu) ** 2, axis=-1, keepdims=True)
    xn = (x - mu) * jax.lax.rsqrt(var + eps) * g_ref[...] + b_ref[...]

    # Reduction linear: (Gblk*H*W, C) @ (C, 4F) + (1, 4F)  -- one big MXU matmul.
    y = jnp.dot(xn, w_ref[...], preferred_element_type=jnp.float32) + wb_ref[...]

    # Pixel shuffle: columns of y are ordered (p, q, f).  The p half selects the
    # output row-parity plane; the (q, f) pair is already the packed last axis of
    # the output block, so only lane slices + leading-dim reshapes are needed.
    y0 = y[:, :twof].reshape(gblk, h, w, twof)     # p = 0 plane
    y1 = y[:, twof:].reshape(gblk, h, w, twof)     # p = 1 plane
    o_ref[:, :, 0, :, :] = y0.astype(o_ref.dtype)
    o_ref[:, :, 1, :, :] = y1.astype(o_ref.dtype)


# ------------------------------- wrapper --------------------------------------

def _pick_group_block(G, HW, target_rows=2048):
    """Largest divisor of G with Gblk*H*W <= target_rows; keep grid >= 2 if possible."""
    best = 1
    for d in range(1, G + 1):
        if G % d == 0 and d * HW <= target_rows:
            best = d
    if G // best < 2 and G >= 2:
        cands = [d for d in range(1, G) if G % d == 0 and G // d >= 2]
        if cands:
            best = max(cands)
    return best


def patch_split_forward(x, params, *, fpn_dim, eps=1e-6):
    """Pallas implementation of PatchSplit.forward(x) with quant=False."""
    B, N, H, W, C = x.shape
    F = fpn_dim
    G = B * N
    HW = H * W

    # (B, N, H, W, C) -> (G, H*W, C): flat-order preserving (free) reshape.
    x2 = x.reshape(G, HW, C)

    gblk = _pick_group_block(G, HW)
    grid = (G // gblk,)

    out = pl.pallas_call(
        functools.partial(patch_split_kernel, eps=eps),
        out_shape=jax.ShapeDtypeStruct((G, H, 2, W, 2 * F), x.dtype),
        grid=grid,
        in_specs=[
            pl.BlockSpec((gblk, HW, C), lambda g: (g, 0, 0)),      # x block
            pl.BlockSpec((1, C), lambda g: (0, 0)),                # LN gamma
            pl.BlockSpec((1, C), lambda g: (0, 0)),                # LN beta
            pl.BlockSpec((C, 4 * F), lambda g: (0, 0)),            # reduction weight
            pl.BlockSpec((1, 4 * F), lambda g: (0, 0)),            # reduction bias
        ],
        out_specs=pl.BlockSpec((gblk, H, 2, W, 2 * F),
                               lambda g: (g, 0, 0, 0, 0)),
        compiler_params=pltpu.CompilerParams(
            dimension_semantics=("parallel",)),
    )(x2, params["gamma"], params["beta"], params["w_red"], params["b_red"])

    # (G, H, 2, W, 2F) -> (B, N, 2H, 2W, F): pure flat (bitcast) reshape.
    return out.reshape(B, N, 2 * H, 2 * W, F)


# ---------------------------- pure-JAX reference -------------------------------

def patch_split_reference(x, params, *, fpn_dim, eps=1e-6):
    """Literal translation of the PyTorch forward (reshape/permute path)."""
    B, N, H, W, C = x.shape
    mu = jnp.mean(x, axis=-1, keepdims=True)
    var = jnp.mean((x - mu) ** 2, axis=-1, keepdims=True)
    xn = (x - mu) * jax.lax.rsqrt(var + eps) * params["gamma"][0] + params["beta"][0]
    y = jnp.einsum("bnhwc,cd->bnhwd", xn, params["w_red"],
                   precision=jax.lax.Precision.HIGHEST) + params["b_red"][0]
    F = fpn_dim
    y = y.reshape(B, N, H, W, 2, 2, F)
    y = jnp.transpose(y, (0, 1, 2, 4, 3, 5, 6))
    return y.reshape(B, N, 2 * H, 2 * W, F)


# --------------------------------- main ---------------------------------------

if __name__ == "__main__":
    # Small shapes consistent with the module: batch=2, N=4 pyramid groups,
    # H=W=8 spatial, dim=64 channels, fpn_dim=32 (reduction out = 4*32 = 128).
    B, N, H, W = 2, 4, 8, 8
    dim, fpn_dim = 64, 32

    key = jax.random.PRNGKey(0)
    k = jax.random.split(key, 5)
    f32 = jnp.float32

    params = {
        "gamma": 1.0 + 0.1 * jax.random.normal(k[0], (1, dim), f32),
        "beta": 0.1 * jax.random.normal(k[1], (1, dim), f32),
        "w_red": 0.02 * jax.random.normal(k[2], (dim, 4 * fpn_dim), f32),
        "b_red": 0.02 * jax.random.normal(k[3], (1, 4 * fpn_dim), f32),
    }
    x = jax.random.normal(k[4], (B, N, H, W, dim), f32)

    out = patch_split_forward(x, params, fpn_dim=fpn_dim)
    out = jax.block_until_ready(out)

    ref = patch_split_reference(x, params, fpn_dim=fpn_dim)
    assert out.shape == (B, N, 2 * H, 2 * W, fpn_dim)
    assert jnp.allclose(out, ref, rtol=1e-4, atol=1e-4), "mismatch vs reference"

    print("KERNEL_OK")
</pallas_src>

<mosaic_0001>
module attributes {stable_mosaic.version = 11 : i64} {
  func.func @patch_split_kernel(%arg0: i32, %arg1: memref<4x64x64xf32, #tpu.memory_space<vmem>>, %arg2: memref<1x64xf32, #tpu.memory_space<vmem>>, %arg3: memref<1x64xf32, #tpu.memory_space<vmem>>, %arg4: memref<64x128xf32, #tpu.memory_space<vmem>>, %arg5: memref<1x128xf32, #tpu.memory_space<vmem>>, %arg6: memref<4x8x2x8x64xf32, #tpu.memory_space<vmem>>) attributes {dimension_semantics = [#tpu.dimension_semantics<parallel>], iteration_bounds = array<i64: 2>, scalar_prefetch = 0 : i64, scratch_operands = 0 : i64, tpu.core_type = #tpu.core_type<tc>, window_params = [{transform_indices = @transform_0, window_bounds = array<i64: 4, 64, 64>}, {pipeline_mode = #tpu.pipeline_mode<synchronous>, transform_indices = @transform_1, window_bounds = array<i64: 1, 64>}, {pipeline_mode = #tpu.pipeline_mode<synchronous>, transform_indices = @transform_2, window_bounds = array<i64: 1, 64>}, {pipeline_mode = #tpu.pipeline_mode<synchronous>, transform_indices = @transform_3, window_bounds = array<i64: 64, 128>}, {pipeline_mode = #tpu.pipeline_mode<synchronous>, transform_indices = @transform_4, window_bounds = array<i64: 1, 128>}, {transform_indices = @transform_5, window_bounds = array<i64: 4, 8, 2, 8, 64>}]} {
    %c0 = arith.constant 0 : index
    %c0_0 = arith.constant 0 : index
    %c0_1 = arith.constant 0 : index
    %0 = vector.load %arg1[%c0, %c0_0, %c0_1] : memref<4x64x64xf32, #tpu.memory_space<vmem>>, vector<4x64x64xf32>
    %1 = vector.shape_cast %0 : vector<4x64x64xf32> to vector<256x64xf32>
    %cst = arith.constant dense<0.000000e+00> : vector<256xf32>
    %2 = vector.multi_reduction <add>, %1, %cst [1] : vector<256x64xf32> to vector<256xf32>
    %3 = vector.shape_cast %2 : vector<256xf32> to vector<256x1xf32>
    %cst_2 = arith.constant 6.400000e+01 : f32
    %4 = vector.broadcast %cst_2 : f32 to vector<256x1xf32>
    %5 = arith.divf %3, %4 : vector<256x1xf32>
    %6 = vector.broadcast %5 : vector<256x1xf32> to vector<256x64xf32>
    %7 = arith.subf %1, %6 : vector<256x64xf32>
    %8 = arith.mulf %7, %7 : vector<256x64xf32>
    %cst_3 = arith.constant dense<0.000000e+00> : vector<256xf32>
    %9 = vector.multi_reduction <add>, %8, %cst_3 [1] : vector<256x64xf32> to vector<256xf32>
    %10 = vector.shape_cast %9 : vector<256xf32> to vector<256x1xf32>
    %cst_4 = arith.constant 6.400000e+01 : f32
    %11 = vector.broadcast %cst_4 : f32 to vector<256x1xf32>
    %12 = arith.divf %10, %11 : vector<256x1xf32>
    %13 = vector.broadcast %5 : vector<256x1xf32> to vector<256x64xf32>
    %14 = arith.subf %1, %13 : vector<256x64xf32>
    %cst_5 = arith.constant 9.99999997E-7 : f32
    %15 = vector.broadcast %cst_5 : f32 to vector<256x1xf32>
    %16 = arith.addf %12, %15 : vector<256x1xf32>
    %17 = math.rsqrt %16 : vector<256x1xf32>
    %18 = vector.broadcast %17 : vector<256x1xf32> to vector<256x64xf32>
    %19 = arith.mulf %14, %18 : vector<256x64xf32>
    %c0_6 = arith.constant 0 : index
    %c0_7 = arith.constant 0 : index
    %20 = vector.load %arg2[%c0_6, %c0_7] : memref<1x64xf32, #tpu.memory_space<vmem>>, vector<1x64xf32>
    %21 = vector.broadcast %20 : vector<1x64xf32> to vector<256x64xf32>
    %22 = arith.mulf %19, %21 : vector<256x64xf32>
    %c0_8 = arith.constant 0 : index
    %c0_9 = arith.constant 0 : index
    %23 = vector.load %arg3[%c0_8, %c0_9] : memref<1x64xf32, #tpu.memory_space<vmem>>, vector<1x64xf32>
    %24 = vector.broadcast %23 : vector<1x64xf32> to vector<256x64xf32>
    %25 = arith.addf %22, %24 : vector<256x64xf32>
    %c0_10 = arith.constant 0 : index
    %c0_11 = arith.constant 0 : index
    %26 = vector.load %arg4[%c0_10, %c0_11] : memref<64x128xf32, #tpu.memory_space<vmem>>, vector<64x128xf32>
    %cst_12 = arith.constant dense<0.000000e+00> : vector<256x128xf32>
    %27 = tpu.matmul %25, %26, %cst_12 {dimension_numbers = #tpu.dot_dimension_numbers<[1], [0], [0], [1], [0, 0, 1, 1], [], []>} : vector<256x64xf32>, vector<64x128xf32>, vector<256x128xf32> -> vector<256x128xf32>
    %c0_13 = arith.constant 0 : index
    %c0_14 = arith.constant 0 : index
    %28 = vector.load %arg5[%c0_13, %c0_14] : memref<1x128xf32, #tpu.memory_space<vmem>>, vector<1x128xf32>
    %29 = vector.broadcast %28 : vector<1x128xf32> to vector<256x128xf32>
    %30 = arith.addf %27, %29 : vector<256x128xf32>
    %31 = vector.extract_strided_slice %30 {offsets = [0, 0], sizes = [256, 64], strides = [1, 1]} : vector<256x128xf32> to vector<256x64xf32>
    %32 = vector.shape_cast %31 : vector<256x64xf32> to vector<4x8x8x64xf32>
    %33 = vector.extract_strided_slice %30 {offsets = [0, 64], sizes = [256, 64], strides = [1, 1]} : vector<256x128xf32> to vector<256x64xf32>
    %34 = vector.shape_cast %33 : vector<256x64xf32> to vector<4x8x8x64xf32>
    %c0_15 = arith.constant 0 : index
    %c0_16 = arith.constant 0 : index
    %c0_17 = arith.constant 0 : index
    %c0_18 = arith.constant 0 : index
    %c0_19 = arith.constant 0 : index
    %35 = vector.load %arg6[%c0_15, %c0_16, %c0_17, %c0_18, %c0_19] : memref<4x8x2x8x64xf32, #tpu.memory_space<vmem>>, vector<4x8x1x8x64xf32>
    %36 = vector.shape_cast %35 : vector<4x8x1x8x64xf32> to vector<4x8x8x64xf32>
    %37 = vector.shape_cast %32 : vector<4x8x8x64xf32> to vector<4x8x1x8x64xf32>
    tpu.vector_store %arg6[%c0_15, %c0_16, %c0_17, %c0_18, %c0_19], %37 {strides = array<i32>} : memref<4x8x2x8x64xf32, #tpu.memory_space<vmem>>, vector<4x8x1x8x64xf32>,
    %c0_20 = arith.constant 0 : index
    %c0_21 = arith.constant 0 : index
    %c1 = arith.constant 1 : index
    %c0_22 = arith.constant 0 : index
    %c0_23 = arith.constant 0 : index
    %38 = vector.load %arg6[%c0_20, %c0_21, %c1, %c0_22, %c0_23] : memref<4x8x2x8x64xf32, #tpu.memory_space<vmem>>, vector<4x8x1x8x64xf32>
    %39 = vector.shape_cast %38 : vector<4x8x1x8x64xf32> to vector<4x8x8x64xf32>
    %40 = vector.shape_cast %34 : vector<4x8x8x64xf32> to vector<4x8x1x8x64xf32>
    tpu.vector_store %arg6[%c0_20, %c0_21, %c1, %c0_22, %c0_23], %40 {strides = array<i32>} : memref<4x8x2x8x64xf32, #tpu.memory_space<vmem>>, vector<4x8x1x8x64xf32>,
    return
  }
  func.func @transform_0(%arg0: i32) -> (i32, i32, i32) {
    %c0_i32 = arith.constant 0 : i32
    %c0_i32_0 = arith.constant 0 : i32
    %c0_i32_1 = arith.constant 0 : i32
    return %arg0, %c0_i32, %c0_i32_0 : i32, i32, i32
  }
  func.func @transform_1(%arg0: i32) -> (i32, i32) {
    %c0_i32 = arith.constant 0 : i32
    %c0_i32_0 = arith.constant 0 : i32
    %c0_i32_1 = arith.constant 0 : i32
    return %c0_i32, %c0_i32_0 : i32, i32
  }
  func.func @transform_2(%arg0: i32) -> (i32, i32) {
    %c0_i32 = arith.constant 0 : i32
    %c0_i32_0 = arith.constant 0 : i32
    %c0_i32_1 = arith.constant 0 : i32
    return %c0_i32, %c0_i32_0 : i32, i32
  }
  func.func @transform_3(%arg0: i32) -> (i32, i32) {
    %c0_i32 = arith.constant 0 : i32
    %c0_i32_0 = arith.constant 0 : i32
    %c0_i32_1 = arith.constant 0 : i32
    return %c0_i32, %c0_i32_0 : i32, i32
  }
  func.func @transform_4(%arg0: i32) -> (i32, i32) {
    %c0_i32 = arith.constant 0 : i32
    %c0_i32_0 = arith.constant 0 : i32
    %c0_i32_1 = arith.constant 0 : i32
    return %c0_i32, %c0_i32_0 : i32, i32
  }
  func.func @transform_5(%arg0: i32) -> (i32, i32, i32, i32, i32) {
    %c0_i32 = arith.constant 0 : i32
    %c0_i32_0 = arith.constant 0 : i32
    %c0_i32_1 = arith.constant 0 : i32
    %c0_i32_2 = arith.constant 0 : i32
    %c0_i32_3 = arith.constant 0 : i32
    return %arg0, %c0_i32, %c0_i32_0, %c0_i32_1, %c0_i32_2 : i32, i32, i32, i32, i32
  }
}

</mosaic_0001>

<bundles_post_ra>
// kernel: tpu_custom_call.1
= control target key start
LH: loop header
LB: loop body
LE: loop exit
PB: predicated region body
PF: predicated region fallthrough
CT: control target
= control target key end

     0   :  { %10 = vsyncpa [#allocation3], 0  ;;  %s2827_s0 = inlined_call_operand.hbm [shape: f32[8,64,64], index: 0, kind: input, shape index: {}]   ;;  %s2828_s1 = inlined_call_operand.vmem [shape: f32[1,64], index: 1, kind: input, shape index: {}]   ;;  %s2829_s2 = inlined_call_operand.vmem [shape: f32[1,64], index: 2, kind: input, shape index: {}]   ;;  %s2830_s3 = inlined_call_operand.hbm [shape: f32[64,128], index: 3, kind: input, shape index: {}]   ;;  %s2831_s4 = inlined_call_operand.vmem [shape: f32[1,128], index: 4, kind: input, shape index: {}]   ;;  %s2832_s5 = inlined_call_operand.hbm [shape: f32[8,8,2,8,64], index: 5, kind: output, shape index: {}]  }
   0x1   :  { %12 = vsyncpa [#allocation3 + $0x1], 0 }
   0x2   :  { %13 = vsyncpa [#allocation6], 0 }
   0x3   :  { %14 = vsyncpa [#allocation4], 0 }
   0x4   :  { %16 = vsyncpa [#allocation4 + $0x1], 0  ;;  %s1927_s18 = smov 0   ;;  %s1929_s19 = smov 0  }
   0x5   :  { %s1931_s20 = smov 0   ;;  %s1933_s21 = smov 0  }
   0x6 LB: > { %s1948_s22 = sadd.s32 4294967295, %s1887_s21   ;;  %s1416_s23 = sadd.s32 4294967294, %s1887_s21   ;;  %s1887_s21 = sphi %s1933_s21, %s2852_s21   ;;  %s1883_s20 = sphi %s1931_s20, %s2851_s20   ;;  %s1879_s19 = sphi %s1929_s19, %s2850_s19   ;;  %s1875_s18 = sphi %s1927_s18, %s2849_s18  }
   0x7   : > { %p42_p0 = scmp.ne.s32.totalorder %s1879_s19, %s1875_s18  ;;  %p2833_p1 = scmp.eq.s32.totalorder %s1948_s22, 0 }
   0x8   : > { %p156_p3 = scmp.eq.s32.totalorder %s1416_s23, 1  ;;  %p1417_p5 = scmp.ge.s32.totalorder %s1887_s21, 1 }
   0x9   : > { %p1957_p4 = por %p2833_p1, %p42_p0  ;;  %p163_p7 = scmp.lt.s32.totalorder %s1887_s21, 3 }
   0xa   : > { %p1962_p6 = por %p156_p3, %p42_p0  ;;  %s1889_s27 = smov [#allocation5]  }
   0xb   : > { %s2836_s24 = scalar_select %p1957_p4, 1, 0 }
   0xc   : > { %s2837_s25 = scalar_select %p1962_p6, 1, 0 }
   0xd   : > { %p1967_p8 = pnand %p1417_p5, %p163_p7  ;;  %s181_s28 = sshll.u32 %s1889_s27, 4  ;;  %s1971_s28 = int_to_ptr.vmem [resolvable:$true] %s181_s28 }
   0xe   : > { %s1983_s30 = sadd.s32 1, %s1887_s21   ;;  %s29_s6 = sadd.s32 1, %s1883_s20 }
   0xf   : > { %s2838_s26 = scalar_select %p1967_p8, 1, 0 }
  0x10   : > { %p1641_p9 = pneg %p1967_p8  ;;  %s26_s7 = ssub.s32 %s1887_s21, %s1983_s30 }
  0x11   : > { %s1759_s10 = scalar_lea.hbm %s2830_s3, 1024 }
  0x12   : > { %p1978_p11 = pnand %p1641_p9, %p2833_p1  ;;  %p1760_p12 = scmp.ne.s32.totalorder %s2830_s3, %s1759_s10 }
  0x13   : > { %p1766_p5 = scmp.lt.u32.totalorder %s1759_s10, %s2830_s3 }
  0x14   : > { %p1761_p13 = pneg %p1978_p11 }
  0x16   : > { %p1762_p0 = pnand %p1761_p13, %p1760_p12 }
  0x18   : > { %p1763_p3 = pneg %p1762_p0 }
  0x1a   : > { %p1768_p7 = pnand %p1766_p5, %p1763_p3 }
  0x1c   : > { %1771 = shalt.err (!%p1768_p7)
}
  0x1d   : > { %s1772_s15 = scalar_lea.vmem %s1971_s28, 1024  ;;  %p1780_p2 = scmp.lt.s32.totalorder %s1971_s28, %s1971_s28 }
  0x1e   : > { %p1773_p9 = scmp.ne.s32.totalorder %s1971_s28, %s1772_s15  ;;  %p1781_p6 = scmp.lt.s32.totalorder %s1772_s15, %s1772_s15 }
  0x20   : > { %p1775_p10 = pnand %p1773_p9, %p1761_p13  ;;  %p1782_p4 = por %p1781_p6, %p1780_p2 }
  0x22   : > { %p1776_p1 = pneg %p1775_p10 }
  0x24   : > { %p1783_p8 = pnand %p1782_p4, %p1776_p1 }
  0x26   : > { %1786 = shalt.err (!%p1783_p8)
}
  0x27   : > { %s1890_s16 = smov 128   ;;  %s1891_s17 = smov 8  }
  0x28   : > { %1644 = dma.hbm_to_vmem [thread:$0]  (!%p1978_p11), %s2830_s3, 1024, %s1971_s28, [#allocation6], %s1890_s16, %s1890_s16, %s1891_s17  }
  0x29   : > { %p27_p1 = scmp.eq.s32.totalorder %s26_s7, 0  ;;  %p36_p2 = scmp.ne.s32.totalorder %s1883_s20, %s1879_s19 }
  0x2a   : > { %p37_p4 = scmp.eq.s32.totalorder %s1887_s21, 0  ;;  %p1654_p6 = scmp.lt.s32.totalorder %s1887_s21, 2 }
  0x2b   : > { %s2017_s8 = scalar_select %p27_p1, %s1883_s20, %s29_s6  }
  0x2c   : > { %p38_p8 = por %p37_p4, %p36_p2  ;;  %p2840_p10 = scmp.eq.s32.totalorder %s1948_s22, 1 }
  0x2d   : > { %s198_s29 = sand.u32 1, %s1883_s20   ;;  %s1502_s10 = sshll.u32 %s1887_s21, 12 }
  0x2e   : > { %p2021_p12 = por %p2840_p10, %p36_p2  ;;  %s1420_s11 = sshll.u32 %s198_s29, 8 }
  0x2f   : > { %s2030_s14 = scalar_lea.hbm %s2827_s0, %s1502_s10  ;;  %s202_s28 = scalar_lea.vmem [#allocation2], %s1420_s11 }
  0x30   : > { %s210_s6 = sshll.u32 %s202_s28, 4  ;;  %p2032_p11 = pnand %p1654_p6, %p38_p8  ;;  %s2036_s6 = int_to_ptr.vmem [resolvable:$true] %s210_s6 }
  0x31   : > { %s2038_s15 = scalar_lea.sflag [#allocation3], %s198_s29  ;;  %s1787_s23 = scalar_lea.hbm %s2030_s14, 4096 }
  0x32   : > { %p1788_p13 = scmp.ne.s32.totalorder %s2030_s14, %s1787_s23  ;;  %p1789_p0 = pneg %p2032_p11 }
  0x33   : > { %s1792_s11 = scalar_lea.hbm %s2827_s0, 8192  ;;  %p1793_p7 = scmp.lt.u32.totalorder %s2030_s14, %s2827_s0 }
  0x34   : > { %p1790_p3 = pnand %p1789_p0, %p1788_p13  ;;  %p1794_p9 = scmp.lt.u32.totalorder %s1792_s11, %s1787_s23 }
  0x35   : > { %p1796_p2 = scmp.lt.u32.totalorder %s1787_s23, %s2030_s14 }
  0x36   : > { %p1791_p5 = pneg %p1790_p3  ;;  %p1795_p1 = por %p1794_p9, %p1793_p7 }
  0x38   : > { %p1797_p4 = por %p1796_p2, %p1795_p1 }
  0x3a   : > { %p1798_p6 = pnand %p1797_p4, %p1791_p5 }
  0x3c   : > { %1801 = shalt.err (!%p1798_p6)
}
  0x3d   : > { %s1802_s29 = scalar_lea.vmem %s2036_s6, 4096  ;;  %s1892_s28 = smov [#allocation2]  }
  0x3e   : > { %p1803_p8 = scmp.ne.s32.totalorder %s2036_s6, %s1802_s29  ;;  %s1807_s27 = sshll.u32 %s1892_s28, 4  ;;  %s1808_s27 = int_to_ptr.vmem [resolvable:$false] %s1807_s27 }
  0x3f   : > { %s1809_s10 = scalar_lea.vmem %s1808_s27, 8192  ;;  %p1810_p3 = scmp.lt.s32.totalorder %s2036_s6, %s1808_s27 }
  0x40   : > { %p1805_p10 = pnand %p1803_p8, %p1789_p0  ;;  %p1811_p7 = scmp.lt.s32.totalorder %s1809_s10, %s1802_s29 }
  0x42   : > { %p1806_p13 = pneg %p1805_p10  ;;  %p1812_p9 = por %p1811_p7, %p1810_p3 }
  0x44   : > { %p1813_p1 = pnand %p1812_p9, %p1806_p13 }
  0x46   : > { %1816 = shalt.err (!%p1813_p1)
}
  0x47   : > { %1648 = dma.hbm_to_vmem [thread:$0]  (!%p2032_p11), %s2030_s14, 4096, %s2036_s6, %s2038_s15, %s1890_s16, %s1890_s16, %s1891_s17  }
  0x48   : > { %p2843_p0 = scmp.ne.s32.totalorder %s2838_s26, 0 }
  0x49   : > { %s2072_s23 = sand.u32 (!%p2843_p0), 1, %s1879_s19   ;;  %p2844_p5 = scmp.ne.s32.totalorder (!%p2843_p0), %s2836_s24, 0 }
  0x4a   : > { %222 = sbr.rel (%p2843_p0) target bundleno = 812 (0x32c), region = 40  ;;  %s1425_s11 = sshll.u32 (!%p2843_p0), %s2072_s23, 8 }
  0x4b   : > { %s225_s12 = scalar_lea.sflag (!%p2843_p0), [#allocation3], %s2072_s23  ;;  %s2076_s13 = scalar_lea.vmem (!%p2843_p0), [#allocation2], %s1425_s11 }
  0x51   : > { %1862 = dma.done.wait (%p2844_p5), %s225_s12, 4096  }
  0x52   : > { %1864 = vsyncadd (%p2844_p5), %s225_s12, 4294963200  ;;  %p2845_p11 = scmp.eq.s32.totalorder %s1948_s22, 0 }
  0x54   : > { %1866 = dma.done.wait (%p2845_p11), [#allocation6], 1024   ;;  %p2846_p2 = pmov %p2845_p11 }
  0x55   : > { %vm293_vm0 = vcmask 523264   ;;  %v2087_v0 = vld [vmem:[%s2076_s13] sm:$0xff]  ;;  %v2090_v1 = vld [vmem:[%s2076_s13 + $0x8] sm:$0xff]  ;;  %v2107_v8 = vld [vmem:[%s2076_s13 + $0x10] sm:$0xff]  ;;  %s1427_s14 = sshll.u32 %s2072_s23, 9  ;;  %s1893_s29 = smov 64  }
  0x56   : > { %1868 = vsyncadd (%p2846_p2), [#allocation6], 4294966272  ;;  %v2093_v2 = vld [vmem:[%s2076_s13 + $0x80] sm:$0xff]  ;;  %v294_v3 = vsel %vm293_vm0, %v2087_v0, 0.0  ;;  %v297_v4 = vsel %vm293_vm0, %v2090_v1, 0.0  ;;  %v2100_v5 = vld [vmem:[%s2076_s13 + $0x88] sm:$0xff] }
  0x57   : > { %295 = vadd.xlane.f32.xlu0 %v294_v3  ;;  %298 = vadd.xlane.f32.xlu1 %v297_v4  ;;  %v342_v6 = vsel %vm293_vm0, %v2093_v2, 0.0  ;;  %v345_v7 = vsel %vm293_vm0, %v2100_v5, 0.0  ;;  %v2110_v9 = vld [vmem:[%s2076_s13 + $0x90] sm:$0xff]  ;;  %v300_v10 = vsel %vm293_vm0, %v2107_v8, 0.0  ;;  %v2117_v12 = vld [vmem:[%s2076_s13 + $0x18] sm:$0xff]  ;;  %v2127_v16 = vld [vmem:[%s2076_s13 + $0x20] sm:$0xff] }
  0x58   : > { %v348_v11 = vsel %vm293_vm0, %v2110_v9, 0.0  ;;  %v2120_v13 = vld [vmem:[%s2076_s13 + $0x98] sm:$0xff]  ;;  %v303_v14 = vsel %vm293_vm0, %v2117_v12, 0.0  ;;  %v2130_v17 = vld [vmem:[%s2076_s13 + $0xa0] sm:$0xff]  ;;  %v306_v18 = vsel %vm293_vm0, %v2127_v16, 0.0  ;;  %v2137_v20 = vld [vmem:[%s2076_s13 + $0x28] sm:$0xff] }
  0x59   : > { %v351_v15 = vsel %vm293_vm0, %v2120_v13, 0.0  ;;  %v354_v19 = vsel %vm293_vm0, %v2130_v17, 0.0  ;;  %v2140_v21 = vld [vmem:[%s2076_s13 + $0xa8] sm:$0xff]  ;;  %v309_v22 = vsel %vm293_vm0, %v2137_v20, 0.0  ;;  %v2147_v24 = vld [vmem:[%s2076_s13 + $0x30] sm:$0xff]  ;;  %v2157_v28 = vld [vmem:[%s2076_s13 + $0x38] sm:$0xff] }
  0x5a   : > { %v357_v23 = vsel %vm293_vm0, %v2140_v21, 0.0  ;;  %v2150_v25 = vld [vmem:[%s2076_s13 + $0xb0] sm:$0xff]  ;;  %v312_v26 = vsel %vm293_vm0, %v2147_v24, 0.0  ;;  %v2160_v29 = vld [vmem:[%s2076_s13 + $0xb8] sm:$0xff]  ;;  %v315_v30 = vsel %vm293_vm0, %v2157_v28, 0.0  ;;  %v2167_v32 = vld [vmem:[%s2076_s13 + $0x40] sm:$0xff] }
  0x5b   : > { %343 = vadd.xlane.f32.xlu0 %v342_v6  ;;  %346 = vadd.xlane.f32.xlu1 %v345_v7  ;;  %v360_v27 = vsel %vm293_vm0, %v2150_v25, 0.0  ;;  %v363_v31 = vsel %vm293_vm0, %v2160_v29, 0.0  ;;  %v2170_v33 = vld [vmem:[%s2076_s13 + $0xc0] sm:$0xff]  ;;  %v318_v34 = vsel %vm293_vm0, %v2167_v32, 0.0  ;;  %v2177_v36 = vld [vmem:[%s2076_s13 + $0x48] sm:$0xff]  ;;  %v2187_v40 = vld [vmem:[%s2076_s13 + $0x50] sm:$0xff] }
  0x5c   : > { %v366_v35 = vsel %vm293_vm0, %v2170_v33, 0.0  ;;  %v2180_v37 = vld [vmem:[%s2076_s13 + $0xc8] sm:$0xff]  ;;  %v321_v38 = vsel %vm293_vm0, %v2177_v36, 0.0  ;;  %v2190_v41 = vld [vmem:[%s2076_s13 + $0xd0] sm:$0xff]  ;;  %v324_v42 = vsel %vm293_vm0, %v2187_v40, 0.0  ;;  %v2197_v44 = vld [vmem:[%s2076_s13 + $0x58] sm:$0xff] }
  0x5d   : > { %v369_v39 = vsel %vm293_vm0, %v2180_v37, 0.0  ;;  %v372_v43 = vsel %vm293_vm0, %v2190_v41, 0.0  ;;  %v2200_v45 = vld [vmem:[%s2076_s13 + $0xd8] sm:$0xff]  ;;  %v327_v46 = vsel %vm293_vm0, %v2197_v44, 0.0  ;;  %v2207_v48 = vld [vmem:[%s2076_s13 + $0x60] sm:$0xff]  ;;  %v2217_v52 = vld [vmem:[%s2076_s13 + $0x68] sm:$0xff] }
  0x5e   : > { %v375_v47 = vsel %vm293_vm0, %v2200_v45, 0.0  ;;  %v2210_v49 = vld [vmem:[%s2076_s13 + $0xe0] sm:$0xff]  ;;  %v330_v50 = vsel %vm293_vm0, %v2207_v48, 0.0  ;;  %v2220_v53 = vld [vmem:[%s2076_s13 + $0xe8] sm:$0xff]  ;;  %v333_v54 = vsel %vm293_vm0, %v2217_v52, 0.0  ;;  %v2227_v56 = vld [vmem:[%s2076_s13 + $0x70] sm:$0xff] }
  0x5f   : > { %301 = vadd.xlane.f32.xlu0 %v300_v10  ;;  %349 = vadd.xlane.f32.xlu1 %v348_v11  ;;  %v378_v51 = vsel %vm293_vm0, %v2210_v49, 0.0  ;;  %v381_v55 = vsel %vm293_vm0, %v2220_v53, 0.0  ;;  %v2230_v57 = vld [vmem:[%s2076_s13 + $0xf0] sm:$0xff]  ;;  %v336_v58 = vsel %vm293_vm0, %v2227_v56, 0.0  ;;  %v2237_v60 = vld [vmem:[%s2076_s13 + $0x78] sm:$0xff]  ;;  %s2584_s15 = scalar_lea.vmem [#allocation7], %s1427_s14 }
  0x60   : > { %v384_v59 = vsel %vm293_vm0, %v2230_v57, 0.0  ;;  %v2240_v61 = vld [vmem:[%s2076_s13 + $0xf8] sm:$0xff]  ;;  %v339_v62 = vsel %vm293_vm0, %v2237_v60, 0.0  ;;  %s1504_s28 = sshll.u32 %s1948_s22, 13  ;;  %s1333_s27 = sshll.u32 %s2584_s15, 4  ;;  %s2781_s27 = int_to_ptr.vmem [resolvable:$true] %s1333_s27 }
  0x61   : > { %v387_v63 = vsel %vm293_vm0, %v2240_v61, 0.0  ;;  %s2779_s12 = scalar_lea.hbm %s2832_s5, %s1504_s28  ;;  %s1319_s22 = scalar_lea.sflag [#allocation4], %s2072_s23 }
  0x62   : > { %s1817_s13 = scalar_lea.vmem %s2781_s27, 8192  ;;  %s1894_s24 = smov [#allocation7]  }
  0x63   : > { %304 = vadd.xlane.f32.xlu0 %v303_v14  ;;  %352 = vadd.xlane.f32.xlu1 %v351_v15  ;;  %p1818_p4 = scmp.ne.s32.totalorder %s2781_s27, %s1817_s13  ;;  %s1821_s26 = sshll.u32 %s1894_s24, 4  ;;  %s1822_s26 = int_to_ptr.vmem [resolvable:$false] %s1821_s26 }
  0x64   : > { %s1823_s16 = scalar_lea.vmem %s1822_s26, 16384  ;;  %p1824_p10 = scmp.lt.s32.totalorder %s2781_s27, %s1822_s26 }
  0x65   : > { %p1819_p6 = pnand %p1818_p4, %p2021_p12  ;;  %p1825_p13 = scmp.lt.s32.totalorder %s1823_s16, %s1817_s13 }
  0x67   : > { %307 = vadd.xlane.f32.xlu0 %v306_v18  ;;  %355 = vadd.xlane.f32.xlu1 %v354_v19  ;;  %p1820_p8 = pneg %p1819_p6  ;;  %p1826_p3 = por %p1825_p13, %p1824_p10 }
  0x69   : > { %p1827_p7 = pnand %p1826_p3, %p1820_p8 }
  0x6b   : > { %310 = vadd.xlane.f32.xlu0 %v309_v22  ;;  %358 = vadd.xlane.f32.xlu1 %v357_v23 }
  0x6f   : > { %313 = vadd.xlane.f32.xlu0 %v312_v26  ;;  %361 = vadd.xlane.f32.xlu1 %v360_v27 }
  0x73   : > { %316 = vadd.xlane.f32.xlu0 %v315_v30  ;;  %364 = vadd.xlane.f32.xlu1 %v363_v31 }
  0x77   : > { %319 = vadd.xlane.f32.xlu0 %v318_v34  ;;  %367 = vadd.xlane.f32.xlu1 %v366_v35 }
  0x7b   : > { %322 = vadd.xlane.f32.xlu0 %v321_v38  ;;  %370 = vadd.xlane.f32.xlu1 %v369_v39 }
  0x7f   : > { %325 = vadd.xlane.f32.xlu0 %v324_v42  ;;  %373 = vadd.xlane.f32.xlu1 %v372_v43 }
  0x83   : > { %328 = vadd.xlane.f32.xlu0 %v327_v46  ;;  %376 = vadd.xlane.f32.xlu1 %v375_v47 }
  0x87   : > { %331 = vadd.xlane.f32.xlu0 %v330_v50  ;;  %379 = vadd.xlane.f32.xlu1 %v378_v51 }
  0x8b   : > { %334 = vadd.xlane.f32.xlu0 %v333_v54  ;;  %382 = vadd.xlane.f32.xlu1 %v381_v55 }
  0x8f   : > { %337 = vadd.xlane.f32.xlu0 %v336_v58  ;;  %385 = vadd.xlane.f32.xlu1 %v384_v59 }
  0x93   : > { %340 = vadd.xlane.f32.xlu0 %v339_v62  ;;  %388 = vadd.xlane.f32.xlu1 %v387_v63 }
  0xe4   : > { %v296_v3 = vpop.xlane.xlu0 %295  ;;  %v299_v4 = vpop.xlane.xlu1 %298 }
  0xe5   : > { %v391_v6 = vmul.f32 0.015625, %v296_v3  ;;  %v392_v7 = vmul.f32 0.015625, %v299_v4 }
  0xe7   : > { %v2247_v10 = vsub.f32 %v2087_v0, %v391_v6  ;;  %v2250_v11 = vsub.f32 %v2090_v1, %v392_v7 }
  0xe8   : > { %v344_v14 = vpop.xlane.xlu0 %343  ;;  %v347_v15 = vpop.xlane.xlu1 %346 }
  0xe9   : > { %v407_v18 = vmul.f32 0.015625, %v344_v14  ;;  %v408_v19 = vmul.f32 0.015625, %v347_v15  ;;  %v455_v22 = vmul.f32 %v2247_v10, %v2247_v10  ;;  %v456_v23 = vmul.f32 %v2250_v11, %v2250_v11 }
  0xeb   : > { %v2257_v26 = vsub.f32 %v2093_v2, %v407_v18  ;;  %v2260_v27 = vsub.f32 %v2100_v5, %v408_v19  ;;  %v487_v0 = vsel %vm293_vm0, %v455_v22, 0.0  ;;  %v490_v31 = vsel %vm293_vm0, %v456_v23, 0.0 }
  0xec   : > { %488 = vadd.xlane.f32.xlu0 %v487_v0  ;;  %v302_v1 = vpop.xlane.xlu0 %301  ;;  %v350_v30 = vpop.xlane.xlu1 %349 }
  0xed   : > { %v393_v34 = vmul.f32 0.015625, %v302_v1  ;;  %v409_v35 = vmul.f32 0.015625, %v350_v30  ;;  %v471_v38 = vmul.f32 %v2257_v26, %v2257_v26  ;;  %v472_v39 = vmul.f32 %v2260_v27, %v2260_v27 }
  0xef   : > { %v2269_v2 = vsub.f32 %v2107_v8, %v393_v34  ;;  %v2272_v5 = vsub.f32 %v2110_v9, %v409_v35  ;;  %v535_v42 = vsel %vm293_vm0, %v471_v38, 0.0  ;;  %v538_v47 = vsel %vm293_vm0, %v472_v39, 0.0 }
  0xf0   : > { %491 = vadd.xlane.f32.xlu0 %v490_v31  ;;  %536 = vadd.xlane.f32.xlu1 %v535_v42  ;;  %v305_v43 = vpop.xlane.xlu0 %304  ;;  %v353_v46 = vpop.xlane.xlu1 %352 }
  0xf1   : > { %v394_v50 = vmul.f32 0.015625, %v305_v43  ;;  %v410_v51 = vmul.f32 0.015625, %v353_v46  ;;  %v457_v54 = vmul.f32 %v2269_v2, %v2269_v2  ;;  %v473_v8 = vmul.f32 %v2272_v5, %v2272_v5 }
  0xf3   : > { %v2281_v55 = vsub.f32 %v2117_v12, %v394_v50  ;;  %v2284_v9 = vsub.f32 %v2120_v13, %v410_v51  ;;  %v493_v58 = vsel %vm293_vm0, %v457_v54, 0.0  ;;  %v541_v63 = vsel %vm293_vm0, %v473_v8, 0.0 }
  0xf4   : > { %539 = vadd.xlane.f32.xlu1 %v538_v47  ;;  %494 = vadd.xlane.f32.xlu0 %v493_v58  ;;  %v308_v59 = vpop.xlane.xlu0 %307  ;;  %v356_v62 = vpop.xlane.xlu1 %355 }
  0xf5   : > { %v395_v3 = vmul.f32 0.015625, %v308_v59  ;;  %v411_v4 = vmul.f32 0.015625, %v356_v62  ;;  %v458_v6 = vmul.f32 %v2281_v55, %v2281_v55  ;;  %v474_v12 = vmul.f32 %v2284_v9, %v2284_v9  ;;  %v789_v59 = vld [vmem:[#allocation5] sm:$0xff]  ;;  %v790_v62 = vld [vmem:[#allocation5 + $0x8] sm:$0xff] }
  0xf7   : > { %v2293_v7 = vsub.f32 %v2127_v16, %v395_v3  ;;  %v2296_v13 = vsub.f32 %v2130_v17, %v411_v4  ;;  %v496_v14 = vsel %vm293_vm0, %v458_v6, 0.0  ;;  %v544_v19 = vsel %vm293_vm0, %v474_v12, 0.0 }
  0xf8   : > { %542 = vadd.xlane.f32.xlu1 %v541_v63  ;;  %497 = vadd.xlane.f32.xlu0 %v496_v14  ;;  %v311_v15 = vpop.xlane.xlu0 %310  ;;  %v359_v18 = vpop.xlane.xlu1 %358 }
  0xf9   : > { %v396_v22 = vmul.f32 0.015625, %v311_v15  ;;  %v412_v23 = vmul.f32 0.015625, %v359_v18  ;;  %v459_v0 = vmul.f32 %v2293_v7, %v2293_v7  ;;  %v475_v16 = vmul.f32 %v2296_v13, %v2296_v13 }
  0xfb   : > { %v2305_v1 = vsub.f32 %v2137_v20, %v396_v22  ;;  %v2308_v17 = vsub.f32 %v2140_v21, %v412_v23  ;;  %v499_v30 = vsel %vm293_vm0, %v459_v0, 0.0  ;;  %v547_v35 = vsel %vm293_vm0, %v475_v16, 0.0  ;;  %v792_v22 = vld [vmem:[#allocation5 + $0x18] sm:$0xff] }
  0xfc   : > { %545 = vadd.xlane.f32.xlu1 %v544_v19  ;;  %500 = vadd.xlane.f32.xlu0 %v499_v30  ;;  %v314_v31 = vpop.xlane.xlu0 %313  ;;  %v362_v34 = vpop.xlane.xlu1 %361 }
  0xfd   : > { %v397_v38 = vmul.f32 0.015625, %v314_v31  ;;  %v413_v39 = vmul.f32 0.015625, %v362_v34  ;;  %v460_v42 = vmul.f32 %v2305_v1, %v2305_v1  ;;  %v476_v20 = vmul.f32 %v2308_v17, %v2308_v17 }
  0xff   : > { %v2317_v43 = vsub.f32 %v2147_v24, %v397_v38  ;;  %v2320_v21 = vsub.f32 %v2150_v25, %v413_v39  ;;  %v502_v46 = vsel %vm293_vm0, %v460_v42, 0.0  ;;  %v550_v51 = vsel %vm293_vm0, %v476_v20, 0.0  ;;  %v794_v20 = vld [vmem:[#allocation5 + $0x28] sm:$0xff] }
 0x100   : > { %548 = vadd.xlane.f32.xlu1 %v547_v35  ;;  %503 = vadd.xlane.f32.xlu0 %v502_v46  ;;  %v317_v47 = vpop.xlane.xlu0 %316  ;;  %v365_v50 = vpop.xlane.xlu1 %364  ;;  %v1609_v25 = vpack.c.bf16 %v790_v62, %v789_v59 }
 0x101   : > { %v398_v54 = vmul.f32 0.015625, %v317_v47  ;;  %v414_v8 = vmul.f32 0.015625, %v365_v50  ;;  %v461_v58 = vmul.f32 %v2317_v43, %v2317_v43  ;;  %v477_v24 = vmul.f32 %v2320_v21, %v2320_v21 }
 0x102   : > { %1610 = vmatprep.subr.bf16.mxu0 %v1609_v25  ;;  %1625 = vmatprep.subr.bf16.mxu1 %v1609_v25 }
 0x103   : > { %v2329_v63 = vsub.f32 %v2157_v28, %v398_v54  ;;  %v2332_v3 = vsub.f32 %v2160_v29, %v414_v8  ;;  %v505_v4 = vsel %vm293_vm0, %v461_v58, 0.0  ;;  %v553_v14 = vsel %vm293_vm0, %v477_v24, 0.0  ;;  %v791_v29 = vld [vmem:[#allocation5 + $0x10] sm:$0xff]  ;;  %1612 = vmatpush3.bf16.msra.mxu0 %v1609_v25  ;;  %1629 = vmatpush3.bf16.msra.mxu1 %v1609_v25  ;;  %v796_v25 = vld [vmem:[#allocation5 + $0x38] sm:$0xff] }
 0x104   : > { %551 = vadd.xlane.f32.xlu1 %v550_v51  ;;  %506 = vadd.xlane.f32.xlu0 %v505_v4  ;;  %v320_v6 = vpop.xlane.xlu0 %319  ;;  %v368_v12 = vpop.xlane.xlu1 %367  ;;  %v1613_v23 = vpack.c.bf16 %v792_v22, %v791_v29 }
 0x105   : > { %v399_v15 = vmul.f32 0.015625, %v320_v6  ;;  %v415_v18 = vmul.f32 0.015625, %v368_v12  ;;  %v462_v19 = vmul.f32 %v2329_v63, %v2329_v63  ;;  %v478_v28 = vmul.f32 %v2332_v3, %v2332_v3 }
 0x106   : > { %1614 = vmatprep.subr.bf16.mxu0 %v1613_v23  ;;  %1626 = vmatprep.subr.bf16.mxu1 %v1613_v23 }
 0x107   : > { %v2341_v0 = vsub.f32 %v2167_v32, %v399_v15  ;;  %v2344_v16 = vsub.f32 %v2170_v33, %v415_v18  ;;  %v508_v30 = vsel %vm293_vm0, %v462_v19, 0.0  ;;  %v556_v35 = vsel %vm293_vm0, %v478_v28, 0.0  ;;  %v793_v33 = vld [vmem:[#allocation5 + $0x20] sm:$0xff]  ;;  %1616 = vmatpush3.bf16.msra.mxu0 %v1613_v23  ;;  %1630 = vmatpush3.bf16.msra.mxu1 %v1613_v23 }
 0x108   : > { %554 = vadd.xlane.f32.xlu1 %v553_v14  ;;  %509 = vadd.xlane.f32.xlu0 %v508_v30  ;;  %v323_v31 = vpop.xlane.xlu0 %322  ;;  %v371_v34 = vpop.xlane.xlu1 %370  ;;  %v1617_v46 = vpack.c.bf16 %v794_v20, %v793_v33 }
 0x109   : > { %v400_v38 = vmul.f32 0.015625, %v323_v31  ;;  %v416_v39 = vmul.f32 0.015625, %v371_v34  ;;  %v463_v42 = vmul.f32 %v2341_v0, %v2341_v0  ;;  %v479_v32 = vmul.f32 %v2344_v16, %v2344_v16 }
 0x10a   : > { %1618 = vmatprep.subr.bf16.mxu0 %v1617_v46  ;;  %1627 = vmatprep.subr.bf16.mxu1 %v1617_v46 }
 0x10b   : > { %v2353_v47 = vsub.f32 %v2177_v36, %v400_v38  ;;  %v2356_v50 = vsub.f32 %v2180_v37, %v416_v39  ;;  %v511_v51 = vsel %vm293_vm0, %v463_v42, 0.0  ;;  %v559_v58 = vsel %vm293_vm0, %v479_v32, 0.0  ;;  %v795_v37 = vld [vmem:[#allocation5 + $0x30] sm:$0xff]  ;;  %1620 = vmatpush3.bf16.msra.mxu0 %v1617_v46  ;;  %1631 = vmatpush3.bf16.msra.mxu1 %v1617_v46 }
 0x10c   : > { %557 = vadd.xlane.f32.xlu1 %v556_v35  ;;  %512 = vadd.xlane.f32.xlu0 %v511_v51  ;;  %v326_v54 = vpop.xlane.xlu0 %325  ;;  %v374_v8 = vpop.xlane.xlu1 %373  ;;  %v1621_v4 = vpack.c.bf16 %v796_v25, %v795_v37 }
 0x10d   : > { %v401_v24 = vmul.f32 0.015625, %v326_v54  ;;  %v417_v59 = vmul.f32 0.015625, %v374_v8  ;;  %v464_v62 = vmul.f32 %v2353_v47, %v2353_v47  ;;  %v480_v36 = vmul.f32 %v2356_v50, %v2356_v50 }
 0x10e   : > { %1622 = vmatprep.subr.bf16.mxu0 %v1621_v4  ;;  %1628 = vmatprep.subr.bf16.mxu1 %v1621_v4 }
 0x10f   : > { %v2365_v6 = vsub.f32 %v2187_v40, %v401_v24  ;;  %v2368_v12 = vsub.f32 %v2190_v41, %v417_v59  ;;  %v514_v14 = vsel %vm293_vm0, %v464_v62, 0.0  ;;  %v562_v19 = vsel %vm293_vm0, %v480_v36, 0.0  ;;  %1624 = vmatpush3.bf16.msra.mxu0 %v1621_v4  ;;  %1632 = vmatpush3.bf16.msra.mxu1 %v1621_v4 }
 0x110   : > { %560 = vadd.xlane.f32.xlu1 %v559_v58  ;;  %515 = vadd.xlane.f32.xlu0 %v514_v14  ;;  %v329_v15 = vpop.xlane.xlu0 %328  ;;  %v377_v18 = vpop.xlane.xlu1 %376 }
 0x111   : > { %v402_v28 = vmul.f32 0.015625, %v329_v15  ;;  %v418_v29 = vmul.f32 0.015625, %v377_v18  ;;  %v465_v22 = vmul.f32 %v2365_v6, %v2365_v6  ;;  %v481_v40 = vmul.f32 %v2368_v12, %v2368_v12 }
 0x113   : > { %v2377_v41 = vsub.f32 %v2197_v44, %v402_v28  ;;  %v2380_v23 = vsub.f32 %v2200_v45, %v418_v29  ;;  %v517_v30 = vsel %vm293_vm0, %v465_v22, 0.0  ;;  %v565_v35 = vsel %vm293_vm0, %v481_v40, 0.0 }
 0x114   : > { %563 = vadd.xlane.f32.xlu1 %v562_v19  ;;  %518 = vadd.xlane.f32.xlu0 %v517_v30  ;;  %v332_v31 = vpop.xlane.xlu0 %331  ;;  %v380_v34 = vpop.xlane.xlu1 %379 }
 0x115   : > { %v403_v38 = vmul.f32 0.015625, %v332_v31  ;;  %v419_v39 = vmul.f32 0.015625, %v380_v34  ;;  %v466_v42 = vmul.f32 %v2377_v41, %v2377_v41  ;;  %v482_v44 = vmul.f32 %v2380_v23, %v2380_v23 }
 0x117   : > { %v2389_v32 = vsub.f32 %v2207_v48, %v403_v38  ;;  %v2392_v45 = vsub.f32 %v2210_v49, %v419_v39  ;;  %v520_v33 = vsel %vm293_vm0, %v466_v42, 0.0  ;;  %v568_v51 = vsel %vm293_vm0, %v482_v44, 0.0 }
 0x118   : > { %566 = vadd.xlane.f32.xlu1 %v565_v35  ;;  %521 = vadd.xlane.f32.xlu0 %v520_v33  ;;  %v335_v20 = vpop.xlane.xlu0 %334  ;;  %v383_v46 = vpop.xlane.xlu1 %382 }
 0x119   : > { %v404_v54 = vmul.f32 0.015625, %v335_v20  ;;  %v420_v8 = vmul.f32 0.015625, %v383_v46  ;;  %v467_v58 = vmul.f32 %v2389_v32, %v2389_v32  ;;  %v483_v48 = vmul.f32 %v2392_v45, %v2392_v45 }
 0x11b   : > { %v2401_v24 = vsub.f32 %v2217_v52, %v404_v54  ;;  %v2404_v49 = vsub.f32 %v2220_v53, %v420_v8  ;;  %v523_v59 = vsel %vm293_vm0, %v467_v58, 0.0  ;;  %v571_v37 = vsel %vm293_vm0, %v483_v48, 0.0 }
 0x11c   : > { %569 = vadd.xlane.f32.xlu1 %v568_v51  ;;  %524 = vadd.xlane.f32.xlu0 %v523_v59  ;;  %v338_v62 = vpop.xlane.xlu0 %337  ;;  %v386_v36 = vpop.xlane.xlu1 %385 }
 0x11d   : > { %v405_v25 = vmul.f32 0.015625, %v338_v62  ;;  %v421_v4 = vmul.f32 0.015625, %v386_v36  ;;  %v468_v14 = vmul.f32 %v2401_v24, %v2401_v24  ;;  %v484_v52 = vmul.f32 %v2404_v49, %v2404_v49 }
 0x11f   : > { %v2413_v15 = vsub.f32 %v2227_v56, %v405_v25  ;;  %v2416_v53 = vsub.f32 %v2230_v57, %v421_v4  ;;  %v526_v18 = vsel %vm293_vm0, %v468_v14, 0.0  ;;  %v574_v29 = vsel %vm293_vm0, %v484_v52, 0.0 }
 0x120   : > { %572 = vadd.xlane.f32.xlu1 %v571_v37  ;;  %527 = vadd.xlane.f32.xlu0 %v526_v18  ;;  %v341_v19 = vpop.xlane.xlu0 %340  ;;  %v389_v28 = vpop.xlane.xlu1 %388 }
 0x121   : > { %v406_v22 = vmul.f32 0.015625, %v341_v19  ;;  %v422_v40 = vmul.f32 0.015625, %v389_v28  ;;  %v469_v30 = vmul.f32 %v2413_v15, %v2413_v15  ;;  %v485_v56 = vmul.f32 %v2416_v53, %v2416_v53 }
 0x123   : > { %v2425_v31 = vsub.f32 %v2237_v60, %v406_v22  ;;  %v2428_v57 = vsub.f32 %v2240_v61, %v422_v40  ;;  %v529_v34 = vsel %vm293_vm0, %v469_v30, 0.0  ;;  %v577_v35 = vsel %vm293_vm0, %v485_v56, 0.0  ;;  %v2441_v22 = vld [vmem:[%s2828_s1] ss:$0 sm:$0xff] }
 0x124   : > { %575 = vadd.xlane.f32.xlu1 %v574_v29  ;;  %530 = vadd.xlane.f32.xlu0 %v529_v34 }
 0x125   : > { %v470_v38 = vmul.f32 %v2425_v31, %v2425_v31  ;;  %v486_v39 = vmul.f32 %v2428_v57, %v2428_v57 }
 0x127   : > { %v532_v42 = vsel %vm293_vm0, %v470_v38, 0.0  ;;  %v580_v60 = vsel %vm293_vm0, %v486_v39, 0.0  ;;  %v2447_v38 = vld [vmem:[%s2829_s2] ss:$0 sm:$0xff] }
 0x128   : > { %578 = vadd.xlane.f32.xlu1 %v577_v35  ;;  %533 = vadd.xlane.f32.xlu0 %v532_v42 }
 0x12c   : > { %581 = vadd.xlane.f32.xlu1 %v580_v60 }
 0x179   : > { %v489_v61 = vpop.xlane.xlu0 %488 }
 0x17a   : > { %v583_v44 = vmul.f32 0.015625, %v489_v61 }
 0x17c   : > { %v615_v33 = vadd.f32 1e-06, %v583_v44 }
 0x17d   : > { %v537_v20 = vpop.xlane.xlu1 %536  ;;  %v492_v46 = vpop.xlane.xlu0 %491 }
 0x17e   : > { %1695 = vrsqrt.f32 %v615_v33  ;;  %v599_v51 = vmul.f32 0.015625, %v537_v20  ;;  %v584_v54 = vmul.f32 0.015625, %v492_v46 }
 0x180   : > { %v631_v8 = vadd.f32 1e-06, %v599_v51  ;;  %v616_v58 = vadd.f32 1e-06, %v584_v54 }
 0x181   : > { %v540_v48 = vpop.xlane.xlu1 %539  ;;  %v495_v59 = vpop.xlane.xlu0 %494 }
 0x182   : > { %1697 = vrsqrt.f32 %v631_v8  ;;  %v600_v62 = vmul.f32 0.015625, %v540_v48  ;;  %v585_v36 = vmul.f32 0.015625, %v495_v59 }
 0x183   : > { %1699 = vrsqrt.f32 %v616_v58 }
 0x184   : > { %v632_v37 = vadd.f32 1e-06, %v600_v62  ;;  %v617_v25 = vadd.f32 1e-06, %v585_v36 }
 0x185   : > { %v543_v4 = vpop.xlane.xlu1 %542  ;;  %v498_v14 = vpop.xlane.xlu0 %497 }
 0x186   : > { %1701 = vrsqrt.f32 %v632_v37  ;;  %v601_v52 = vmul.f32 0.015625, %v543_v4  ;;  %v586_v18 = vmul.f32 0.015625, %v498_v14 }
 0x187   : > { %1703 = vrsqrt.f32 %v617_v25 }
 0x188   : > { %v1696_v19 = vpop.eup %1695  ;;  %v633_v28 = vadd.f32 1e-06, %v601_v52  ;;  %v618_v29 = vadd.f32 1e-06, %v586_v18 }
 0x189   : > { %v546_v40 = vpop.xlane.xlu1 %545  ;;  %v501_v30 = vpop.xlane.xlu0 %500  ;;  %v679_v56 = vmul.f32 %v1696_v19, %v2247_v10 }
 0x18a   : > { %1705 = vrsqrt.f32 %v633_v28  ;;  %v602_v34 = vmul.f32 0.015625, %v546_v40  ;;  %v587_v35 = vmul.f32 0.015625, %v501_v30 }
 0x18b   : > { %1707 = vrsqrt.f32 %v618_v29  ;;  %v718_v39 = vmul.f32 %v2441_v22, %v679_v56 }
 0x18c   : > { %v1698_v42 = vpop.eup %1697  ;;  %v634_v60 = vadd.f32 1e-06, %v602_v34  ;;  %v619_v61 = vadd.f32 1e-06, %v587_v35 }
 0x18d   : > { %v1700_v44 = vpop.eup %1699  ;;  %v549_v33 = vpop.xlane.xlu1 %548  ;;  %v757_v46 = vadd.f32 %v2447_v38, %v718_v39  ;;  %v695_v10 = vmul.f32 %v1698_v42, %v2257_v26 }
 0x18e   : > { %v504_v20 = vpop.xlane.xlu0 %503  ;;  %1709 = vrsqrt.f32 %v634_v60  ;;  %v603_v51 = vmul.f32 0.015625, %v549_v33  ;;  %v680_v8 = vmul.f32 %v1700_v44, %v2250_v11 }
 0x18f   : > { %v588_v54 = vmul.f32 0.015625, %v504_v20  ;;  %1711 = vrsqrt.f32 %v619_v61  ;;  %1561 = vmatprep.mubr.msk.f32.mxu0 %vm293_vm0, %v757_v46  ;;  %v734_v58 = vmul.f32 %v2441_v22, %v695_v10 }
 0x190   : > { %v1702_v48 = vpop.eup %1701  ;;  %v635_v59 = vadd.f32 1e-06, %v603_v51  ;;  %v719_v36 = vmul.f32 %v2441_v22, %v680_v8 }
 0x191   : > { %v620_v62 = vadd.f32 1e-06, %v588_v54  ;;  %v1704_v37 = vpop.eup %1703  ;;  %v552_v25 = vpop.xlane.xlu1 %551  ;;  %v773_v26 = vadd.f32 %v2447_v38, %v734_v58  ;;  %v696_v14 = vmul.f32 %v1702_v48, %v2260_v27 }
 0x192   : > { %v507_v4 = vpop.xlane.xlu0 %506  ;;  %1713 = vrsqrt.f32 %v635_v59  ;;  %v604_v52 = vmul.f32 0.015625, %v552_v25  ;;  %v758_v18 = vadd.f32 %v2447_v38, %v719_v36  ;;  %v681_v19 = vmul.f32 %v1704_v37, %v2269_v2 }
 0x193   : > { %v589_v11 = vmul.f32 0.015625, %v507_v4  ;;  %1715 = vrsqrt.f32 %v620_v62  ;;  %1585 = vmatprep.mubr.msk.f32.mxu1 %vm293_vm0, %v773_v26  ;;  %v735_v28 = vmul.f32 %v2441_v22, %v696_v14 }
 0x194   : > { %v1706_v29 = vpop.eup %1705  ;;  %v636_v40 = vadd.f32 1e-06, %v604_v52  ;;  %1562 = vmatmul.mubr.msk.f32.vlgmr.msra.gmra.mrb[0].mxu0 %vm293_vm0, %v758_v18  ;;  %v720_v35 = vmul.f32 %v2441_v22, %v681_v19 }
 0x195   : > { %v621_v30 = vadd.f32 1e-06, %v589_v11  ;;  %v1708_v56 = vpop.eup %1707  ;;  %v555_v34 = vpop.xlane.xlu1 %554  ;;  %v774_v39 = vadd.f32 %v2447_v38, %v735_v28  ;;  %v697_v42 = vmul.f32 %v1706_v29, %v2272_v5 }
 0x196   : > { %v510_v27 = vpop.xlane.xlu0 %509  ;;  %1717 = vrsqrt.f32 %v636_v40  ;;  %v605_v60 = vmul.f32 0.015625, %v555_v34  ;;  %v682_v2 = vmul.f32 %v1708_v56, %v2281_v55  ;;  %v759_v44 = vadd.f32 %v2447_v38, %v720_v35 }
 0x197   : > { %v590_v61 = vmul.f32 0.015625, %v510_v27  ;;  %1719 = vrsqrt.f32 %v621_v30  ;;  %1586 = vmatmul.mubr.msk.f32.vlgmr.msra.gmra.mrb[0].mxu1 %vm293_vm0, %v774_v39  ;;  %v736_v33 = vmul.f32 %v2441_v22, %v697_v42 }
 0x198   : > { %v1710_v20 = vpop.eup %1709  ;;  %v637_v46 = vadd.f32 1e-06, %v605_v60  ;;  %v721_v51 = vmul.f32 %v2441_v22, %v682_v2  ;;  %1564 = vmatprep.mubr.msk.f32.mxu0 %vm293_vm0, %v759_v44 }
 0x199   : > { %v622_v10 = vadd.f32 1e-06, %v590_v61  ;;  %v1712_v54 = vpop.eup %1711  ;;  %v558_v5 = vpop.xlane.xlu1 %557  ;;  %v775_v58 = vadd.f32 %v2447_v38, %v736_v33  ;;  %v698_v55 = vmul.f32 %v1710_v20, %v2284_v9 }
 0x19a   : > { %v513_v8 = vpop.xlane.xlu0 %512  ;;  %1721 = vrsqrt.f32 %v637_v46  ;;  %v606_v48 = vmul.f32 0.015625, %v558_v5  ;;  %v760_v62 = vadd.f32 %v2447_v38, %v721_v51  ;;  %v683_v36 = vmul.f32 %v1712_v54, %v2293_v7 }
 0x19b   : > { %v591_v59 = vmul.f32 0.015625, %v513_v8  ;;  %1723 = vrsqrt.f32 %v622_v10  ;;  %1588 = vmatprep.mubr.msk.f32.mxu1 %vm293_vm0, %v775_v58  ;;  %v737_v37 = vmul.f32 %v2441_v22, %v698_v55 }
 0x19c   : > { %v1714_v25 = vpop.eup %1713  ;;  %v638_v4 = vadd.f32 1e-06, %v606_v48  ;;  %1565 = vmatmul.mubr.msk.f32.gmra.mrb[2].mxu0 %vm293_vm0, %v760_v62  ;;  %v722_v11 = vmul.f32 %v2441_v22, %v683_v36 }
 0x19d   : > { %v623_v26 = vadd.f32 1e-06, %v591_v59  ;;  %v1716_v14 = vpop.eup %1715  ;;  %v561_v52 = vpop.xlane.xlu1 %560  ;;  %v776_v18 = vadd.f32 %v2447_v38, %v737_v37  ;;  %v699_v19 = vmul.f32 %v1714_v25, %v2296_v13 }
 0x19e   : > { %v516_v9 = vpop.xlane.xlu0 %515  ;;  %1725 = vrsqrt.f32 %v638_v4  ;;  %v607_v28 = vmul.f32 0.015625, %v561_v52  ;;  %v684_v7 = vmul.f32 %v1716_v14, %v2305_v1  ;;  %v761_v40 = vadd.f32 %v2447_v38, %v722_v11 }
 0x19f   : > { %v592_v29 = vmul.f32 0.015625, %v516_v9  ;;  %1727 = vrsqrt.f32 %v623_v26  ;;  %1589 = vmatmul.mubr.msk.f32.gmra.mrb[2].mxu1 %vm293_vm0, %v776_v18  ;;  %v738_v30 = vmul.f32 %v2441_v22, %v699_v19 }
 0x1a0   : > { %v1718_v56 = vpop.eup %1717  ;;  %v639_v34 = vadd.f32 1e-06, %v607_v28  ;;  %v723_v35 = vmul.f32 %v2441_v22, %v684_v7  ;;  %1567 = vmatprep.mubr.msk.f32.mxu0 %vm293_vm0, %v761_v40 }
 0x1a1   : > { %v624_v27 = vadd.f32 1e-06, %v592_v29  ;;  %v1720_v39 = vpop.eup %1719  ;;  %v564_v13 = vpop.xlane.xlu1 %563  ;;  %v777_v60 = vadd.f32 %v2447_v38, %v738_v30  ;;  %v700_v1 = vmul.f32 %v1718_v56, %v2308_v17 }
 0x1a2   : > { %v519_v42 = vpop.xlane.xlu0 %518  ;;  %1729 = vrsqrt.f32 %v639_v34  ;;  %v608_v61 = vmul.f32 0.015625, %v564_v13  ;;  %v762_v44 = vadd.f32 %v2447_v38, %v723_v35  ;;  %v685_v33 = vmul.f32 %v1720_v39, %v2317_v43 }
 0x1a3   : > { %v593_v2 = vmul.f32 0.015625, %v519_v42  ;;  %1731 = vrsqrt.f32 %v624_v27  ;;  %1591 = vmatprep.mubr.msk.f32.mxu1 %vm293_vm0, %v777_v60  ;;  %v739_v20 = vmul.f32 %v2441_v22, %v700_v1 }
 0x1a4   : > { %v1722_v46 = vpop.eup %1721  ;;  %v640_v10 = vadd.f32 1e-06, %v608_v61  ;;  %1568 = vmatmul.mubr.msk.f32.gmra.mrb[4].mxu0 %vm293_vm0, %v762_v44  ;;  %v724_v8 = vmul.f32 %v2441_v22, %v685_v33 }
 0x1a5   : > { %v625_v51 = vadd.f32 1e-06, %v593_v2  ;;  %v1724_v54 = vpop.eup %1723  ;;  %v567_v5 = vpop.xlane.xlu1 %566  ;;  %v778_v58 = vadd.f32 %v2447_v38, %v739_v20  ;;  %v701_v55 = vmul.f32 %v1722_v46, %v2320_v21 }
 0x1a6   : > { %v522_v17 = vpop.xlane.xlu0 %521  ;;  %1733 = vrsqrt.f32 %v640_v10  ;;  %v609_v48 = vmul.f32 0.015625, %v567_v5  ;;  %v686_v43 = vmul.f32 %v1724_v54, %v2329_v63  ;;  %v763_v62 = vadd.f32 %v2447_v38, %v724_v8 }
 0x1a7   : > { %v594_v59 = vmul.f32 0.015625, %v522_v17  ;;  %1735 = vrsqrt.f32 %v625_v51  ;;  %1592 = vmatmul.mubr.msk.f32.gmra.mrb[4].mxu1 %vm293_vm0, %v778_v58  ;;  %v740_v36 = vmul.f32 %v2441_v22, %v701_v55 }
 0x1a8   : > { %v1726_v37 = vpop.eup %1725  ;;  %v641_v25 = vadd.f32 1e-06, %v609_v48  ;;  %v725_v26 = vmul.f32 %v2441_v22, %v686_v43  ;;  %1570 = vmatprep.mubr.msk.f32.mxu0 %vm293_vm0, %v763_v62 }
 0x1a9   : > { %v626_v4 = vadd.f32 1e-06, %v594_v59  ;;  %v1728_v14 = vpop.eup %1727  ;;  %v570_v21 = vpop.xlane.xlu1 %569  ;;  %v779_v9 = vadd.f32 %v2447_v38, %v740_v36  ;;  %v702_v63 = vmul.f32 %v1726_v37, %v2332_v3 }
 0x1aa   : > { %v525_v52 = vpop.xlane.xlu0 %524  ;;  %1737 = vrsqrt.f32 %v641_v25  ;;  %v610_v11 = vmul.f32 0.015625, %v570_v21  ;;  %v764_v19 = vadd.f32 %v2447_v38, %v725_v26  ;;  %v687_v28 = vmul.f32 %v1728_v14, %v2341_v0 }
 0x1ab   : > { %v595_v18 = vmul.f32 0.015625, %v525_v52  ;;  %1739 = vrsqrt.f32 %v626_v4  ;;  %1594 = vmatprep.mubr.msk.f32.mxu1 %vm293_vm0, %v779_v9  ;;  %v741_v29 = vmul.f32 %v2441_v22, %v702_v63 }
 0x1ac   : > { %v1730_v7 = vpop.eup %1729  ;;  %v642_v40 = vadd.f32 1e-06, %v610_v11  ;;  %1571 = vmatmul.mubr.msk.f32.gmra.mrb[6].mxu0 %vm293_vm0, %v764_v19  ;;  %v726_v27 = vmul.f32 %v2441_v22, %v687_v28 }
 0x1ad   : > { %v627_v30 = vadd.f32 1e-06, %v595_v18  ;;  %v1732_v56 = vpop.eup %1731  ;;  %v573_v34 = vpop.xlane.xlu1 %572  ;;  %v780_v35 = vadd.f32 %v2447_v38, %v741_v29  ;;  %v703_v39 = vmul.f32 %v1730_v7, %v2344_v16 }
 0x1ae   : > { %v528_v3 = vpop.xlane.xlu0 %527  ;;  %1741 = vrsqrt.f32 %v642_v40  ;;  %v611_v13 = vmul.f32 0.015625, %v573_v34  ;;  %v688_v0 = vmul.f32 %v1732_v56, %v2353_v47  ;;  %v765_v60 = vadd.f32 %v2447_v38, %v726_v27 }
 0x1af   : > { %v596_v42 = vmul.f32 0.015625, %v528_v3  ;;  %1743 = vrsqrt.f32 %v627_v30  ;;  %1595 = vmatmul.mubr.msk.f32.gmra.mrb[6].mxu1 %vm293_vm0, %v780_v35  ;;  %v742_v1 = vmul.f32 %v2441_v22, %v703_v39 }
 0x1b0   : > { %v1734_v61 = vpop.eup %1733  ;;  %v643_v2 = vadd.f32 1e-06, %v611_v13  ;;  %v727_v33 = vmul.f32 %v2441_v22, %v688_v0  ;;  %1573 = vmatprep.mubr.msk.f32.mxu0 %vm293_vm0, %v765_v60 }
 0x1b1   : > { %v628_v44 = vadd.f32 1e-06, %v596_v42  ;;  %v1736_v20 = vpop.eup %1735  ;;  %v576_v16 = vpop.xlane.xlu1 %575  ;;  %v781_v10 = vadd.f32 %v2447_v38, %v742_v1  ;;  %v704_v47 = vmul.f32 %v1734_v61, %v2356_v50 }
 0x1b2   : > { %v531_v46 = vpop.xlane.xlu0 %530  ;;  %1745 = vrsqrt.f32 %v643_v2  ;;  %v612_v51 = vmul.f32 0.015625, %v576_v16  ;;  %v766_v5 = vadd.f32 %v2447_v38, %v727_v33  ;;  %v689_v17 = vmul.f32 %v1736_v20, %v2365_v6 }
 0x1b3   : > { %v597_v54 = vmul.f32 0.015625, %v531_v46  ;;  %1747 = vrsqrt.f32 %v628_v44  ;;  %1597 = vmatprep.mubr.msk.f32.mxu1 %vm293_vm0, %v781_v10  ;;  %v743_v8 = vmul.f32 %v2441_v22, %v704_v47 }
 0x1b4   : > { %v1738_v58 = vpop.eup %1737  ;;  %v644_v55 = vadd.f32 1e-06, %v612_v51  ;;  %1574 = vmatmul.mubr.msk.f32.gmra.mrb[8].mxu0 %vm293_vm0, %v766_v5  ;;  %v728_v62 = vmul.f32 %v2441_v22, %v689_v17  ;;  %v2580_v5 = vld [vmem:[%s2831_s4] ss:$0 sm:$0xff] }
 0x1b5   : > { %v629_v48 = vadd.f32 1e-06, %v597_v54  ;;  %v1740_v59 = vpop.eup %1739  ;;  %v579_v43 = vpop.xlane.xlu1 %578  ;;  %v782_v36 = vadd.f32 %v2447_v38, %v743_v8  ;;  %v705_v37 = vmul.f32 %v1738_v58, %v2368_v12 }
 0x1b6   : > { %v534_v50 = vpop.xlane.xlu0 %533  ;;  %1749 = vrsqrt.f32 %v644_v55  ;;  %v613_v25 = vmul.f32 0.015625, %v579_v43  ;;  %v690_v6 = vmul.f32 %v1740_v59, %v2377_v41  ;;  %v767_v26 = vadd.f32 %v2447_v38, %v728_v62 }
 0x1b7   : > { %v598_v4 = vmul.f32 0.015625, %v534_v50  ;;  %1751 = vrsqrt.f32 %v629_v48  ;;  %1598 = vmatmul.mubr.msk.f32.gmra.mrb[8].mxu1 %vm293_vm0, %v782_v36  ;;  %v744_v14 = vmul.f32 %v2441_v22, %v705_v37 }
 0x1b8   : > { %v1742_v21 = vpop.eup %1741  ;;  %v645_v52 = vadd.f32 1e-06, %v613_v25  ;;  %v729_v63 = vmul.f32 %v2441_v22, %v690_v6  ;;  %1576 = vmatprep.mubr.msk.f32.mxu0 %vm293_vm0, %v767_v26 }
 0x1b9   : > { %v630_v9 = vadd.f32 1e-06, %v598_v4  ;;  %v1744_v11 = vpop.eup %1743  ;;  %v582_v12 = vpop.xlane.xlu1 %581  ;;  %v783_v18 = vadd.f32 %v2447_v38, %v744_v14  ;;  %v706_v41 = vmul.f32 %v1742_v21, %v2380_v23 }
 0x1ba   : > { %1753 = vrsqrt.f32 %v645_v52  ;;  %v614_v19 = vmul.f32 0.015625, %v582_v12  ;;  %v768_v28 = vadd.f32 %v2447_v38, %v729_v63  ;;  %v691_v29 = vmul.f32 %v1744_v11, %v2389_v32 }
 0x1bb   : > { %1755 = vrsqrt.f32 %v630_v9  ;;  %1600 = vmatprep.mubr.msk.f32.mxu1 %vm293_vm0, %v783_v18  ;;  %v745_v7 = vmul.f32 %v2441_v22, %v706_v41 }
 0x1bc   : > { %v1746_v40 = vpop.eup %1745  ;;  %v646_v30 = vadd.f32 1e-06, %v614_v19  ;;  %1577 = vmatmul.mubr.msk.f32.gmra.mrb[10].mxu0 %vm293_vm0, %v768_v28  ;;  %v730_v56 = vmul.f32 %v2441_v22, %v691_v29 }
 0x1bd   : > { %v1748_v34 = vpop.eup %1747  ;;  %v784_v23 = vadd.f32 %v2447_v38, %v745_v7  ;;  %v707_v3 = vmul.f32 %v1746_v40, %v2392_v45 }
 0x1be   : > { %1757 = vrsqrt.f32 %v646_v30  ;;  %v769_v27 = vadd.f32 %v2447_v38, %v730_v56  ;;  %v692_v32 = vmul.f32 %v1748_v34, %v2401_v24 }
 0x1bf   : > { %1601 = vmatmul.mubr.msk.f32.gmra.mrb[10].mxu1 %vm293_vm0, %v784_v23  ;;  %v746_v35 = vmul.f32 %v2441_v22, %v707_v3 }
 0x1c0   : > { %v1750_v39 = vpop.eup %1749  ;;  %1579 = vmatprep.mubr.msk.f32.mxu0 %vm293_vm0, %v769_v27  ;;  %v731_v13 = vmul.f32 %v2441_v22, %v692_v32 }
 0x1c1   : > { %v1752_v42 = vpop.eup %1751  ;;  %v785_v0 = vadd.f32 %v2447_v38, %v746_v35  ;;  %v708_v60 = vmul.f32 %v1750_v39, %v2404_v49 }
 0x1c2   : > { %v770_v45 = vadd.f32 %v2447_v38, %v731_v13  ;;  %v693_v1 = vmul.f32 %v1752_v42, %v2413_v15 }
 0x1c3   : > { %1603 = vmatprep.mubr.msk.f32.mxu1 %vm293_vm0, %v785_v0  ;;  %v747_v24 = vmul.f32 %v2441_v22, %v708_v60 }
 0x1c4   : > { %v1754_v61 = vpop.eup %1753  ;;  %1580 = vmatmul.mubr.msk.f32.gmra.mrb[12].mxu0 %vm293_vm0, %v770_v45  ;;  %v732_v2 = vmul.f32 %v2441_v22, %v693_v1 }
 0x1c5   : > { %v1756_v44 = vpop.eup %1755  ;;  %v786_v33 = vadd.f32 %v2447_v38, %v747_v24  ;;  %v709_v20 = vmul.f32 %v1754_v61, %v2416_v53 }
 0x1c6   : > { %v771_v49 = vadd.f32 %v2447_v38, %v732_v2  ;;  %v694_v16 = vmul.f32 %v1756_v44, %v2425_v31 }
 0x1c7   : > { %1604 = vmatmul.mubr.msk.f32.gmra.mrb[12].mxu1 %vm293_vm0, %v786_v33  ;;  %v748_v15 = vmul.f32 %v2441_v22, %v709_v20 }
 0x1c8   : > { %v1758_v46 = vpop.eup %1757  ;;  %1582 = vmatprep.mubr.msk.f32.mxu0 %vm293_vm0, %v771_v49  ;;  %v733_v10 = vmul.f32 %v2441_v22, %v694_v16 }
 0x1c9   : > { %v787_v47 = vadd.f32 %v2447_v38, %v748_v15  ;;  %v710_v51 = vmul.f32 %v1758_v46, %v2428_v57 }
 0x1ca   : > { %v772_v53 = vadd.f32 %v2447_v38, %v733_v10 }
 0x1cb   : > { %1606 = vmatprep.mubr.msk.f32.mxu1 %vm293_vm0, %v787_v47  ;;  %v749_v54 = vmul.f32 %v2441_v22, %v710_v51 }
 0x1cc   : > { %1583 = vmatmul.mubr.msk.f32.gmra.mrb[14].mxu0 %vm293_vm0, %v772_v53 }
 0x1cd   : > { %v788_v31 = vadd.f32 %v2447_v38, %v749_v54 }
 0x1cf   : > { %1607 = vmatmul.mubr.msk.f32.gmra.mrb[14].mxu1 %vm293_vm0, %v788_v31 }
 0x267   : > { %v1563_v17 = vpop.f32.mrb[0].mxu0 }
 0x268   : > { %v972_v57 = vadd.f32 %v1563_v17, %v2580_v5  ;;  %v966_v8 = vpop.f32.mrb[1].mxu0 }
 0x269   : > { %v967_v58 = vadd.f32 %v2580_v5, %v966_v8 }
 0x26a   : > { %1126 = vst.msk [vmem:[%s2584_s15 + $0x10] sm:$0xff] %vm293_vm0, %v972_v57  ;;  %1191 = vrot.lane.b32.xlu1 %v972_v57, %s1893_s29  ;;  %v1587_v22 = vpop.f32.mrb[0].mxu1 }
 0x26b   : > { %1125 = vst.msk [vmem:[%s2584_s15] sm:$0xff] %vm293_vm0, %v967_v58  ;;  %v1052_v38 = vadd.f32 %v1587_v22, %v2580_v5  ;;  %1189 = vrot.lane.b32.xlu0 %v967_v58, %s1893_s29  ;;  %v1046_v55 = vpop.f32.mrb[1].mxu1 }
 0x26c   : > { %v1047_v48 = vadd.f32 %v2580_v5, %v1046_v55 }
 0x26d   : > { %1142 = vst.msk [vmem:[%s2584_s15 + $0x110] sm:$0xff] %vm293_vm0, %v1052_v38 }
 0x26e   : > { %1141 = vst.msk [vmem:[%s2584_s15 + $0x100] sm:$0xff] %vm293_vm0, %v1047_v48  ;;  %1223 = vrot.lane.b32.xlu1 %v1052_v38, %s1893_s29 }
 0x26f   : > { %1221 = vrot.lane.b32.xlu0 %v1047_v48, %s1893_s29  ;;  %v1566_v59 = vpop.f32.mrb[2].mxu0 }
 0x270   : > { %v982_v43 = vadd.f32 %v1566_v59, %v2580_v5  ;;  %v976_v50 = vpop.f32.mrb[3].mxu0 }
 0x271   : > { %v977_v62 = vadd.f32 %v2580_v5, %v976_v50 }
 0x272   : > { %1128 = vst.msk [vmem:[%s2584_s15 + $0x30] sm:$0xff] %vm293_vm0, %v982_v43  ;;  %1195 = vrot.lane.b32.xlu1 %v982_v43, %s1893_s29  ;;  %v1590_v36 = vpop.f32.mrb[2].mxu1 }
 0x273   : > { %1127 = vst.msk [vmem:[%s2584_s15 + $0x20] sm:$0xff] %vm293_vm0, %v977_v62  ;;  %v1062_v37 = vadd.f32 %v1590_v36, %v2580_v5  ;;  %v1056_v25 = vpop.f32.mrb[3].mxu1 }
 0x274   : > { %v1057_v4 = vadd.f32 %v2580_v5, %v1056_v25 }
 0x275   : > { %1144 = vst.msk [vmem:[%s2584_s15 + $0x130] sm:$0xff] %vm293_vm0, %v1062_v37 }
 0x276   : > { %1143 = vst.msk [vmem:[%s2584_s15 + $0x120] sm:$0xff] %vm293_vm0, %v1057_v4  ;;  %1227 = vrot.lane.b32.xlu1 %v1062_v37, %s1893_s29  ;;  %1225 = vrot.lane.b32.xlu0 %v1057_v4, %s1893_s29 }
 0x277   : > { %v1569_v6 = vpop.f32.mrb[4].mxu0 }
 0x278   : > { %v992_v26 = vadd.f32 %v1569_v6, %v2580_v5  ;;  %v986_v14 = vpop.f32.mrb[5].mxu0 }
 0x279   : > { %v987_v21 = vadd.f32 %v2580_v5, %v986_v14 }
 0x27a   : > { %1130 = vst.msk [vmem:[%s2584_s15 + $0x50] sm:$0xff] %vm293_vm0, %v992_v26  ;;  %1193 = vrot.lane.b32.xlu1 %v977_v62, %s1893_s29  ;;  %v1593_v52 = vpop.f32.mrb[4].mxu1 }
 0x27b   : > { %1129 = vst.msk [vmem:[%s2584_s15 + $0x40] sm:$0xff] %vm293_vm0, %v987_v21  ;;  %v1072_v9 = vadd.f32 %v1593_v52, %v2580_v5  ;;  %1197 = vrot.lane.b32.xlu0 %v987_v21, %s1893_s29  ;;  %v1066_v63 = vpop.f32.mrb[5].mxu1 }
 0x27c   : > { %v1067_v11 = vadd.f32 %v2580_v5, %v1066_v63 }
 0x27d   : > { %1146 = vst.msk [vmem:[%s2584_s15 + $0x150] sm:$0xff] %vm293_vm0, %v1072_v9 }
 0x27e   : > { %1145 = vst.msk [vmem:[%s2584_s15 + $0x140] sm:$0xff] %vm293_vm0, %v1067_v11  ;;  %1199 = vrot.lane.b32.xlu1 %v992_v26, %s1893_s29 }
 0x27f   : > { %1229 = vrot.lane.b32.xlu0 %v1067_v11, %s1893_s29  ;;  %v1572_v12 = vpop.f32.mrb[6].mxu0 }
 0x280   : > { %v1002_v18 = vadd.f32 %v1572_v12, %v2580_v5  ;;  %v996_v41 = vpop.f32.mrb[7].mxu0 }
 0x281   : > { %v997_v19 = vadd.f32 %v2580_v5, %v996_v41 }
 0x282   : > { %1132 = vst.msk [vmem:[%s2584_s15 + $0x70] sm:$0xff] %vm293_vm0, %v1002_v18  ;;  %1231 = vrot.lane.b32.xlu1 %v1072_v9, %s1893_s29  ;;  %v1596_v28 = vpop.f32.mrb[6].mxu1 }
 0x283   : > { %1131 = vst.msk [vmem:[%s2584_s15 + $0x60] sm:$0xff] %vm293_vm0, %v997_v19  ;;  %v1082_v29 = vadd.f32 %v1596_v28, %v2580_v5  ;;  %1201 = vrot.lane.b32.xlu0 %v997_v19, %s1893_s29  ;;  %v1076_v7 = vpop.f32.mrb[7].mxu1 }
 0x284   : > { %v1077_v40 = vadd.f32 %v2580_v5, %v1076_v7 }
 0x285   : > { %1148 = vst.msk [vmem:[%s2584_s15 + $0x170] sm:$0xff] %vm293_vm0, %v1082_v29 }
 0x286   : > { %1147 = vst.msk [vmem:[%s2584_s15 + $0x160] sm:$0xff] %vm293_vm0, %v1077_v40  ;;  %1203 = vrot.lane.b32.xlu1 %v1002_v18, %s1893_s29 }
 0x287   : > { %1233 = vrot.lane.b32.xlu0 %v1077_v40, %s1893_s29  ;;  %v1575_v30 = vpop.f32.mrb[8].mxu0 }
 0x288   : > { %v1012_v56 = vadd.f32 %v1575_v30, %v2580_v5  ;;  %v1006_v34 = vpop.f32.mrb[9].mxu0 }
 0x289   : > { %v1007_v23 = vadd.f32 %v2580_v5, %v1006_v34 }
 0x28a   : > { %1134 = vst.msk [vmem:[%s2584_s15 + $0x90] sm:$0xff] %vm293_vm0, %v1012_v56  ;;  %1235 = vrot.lane.b32.xlu1 %v1082_v29, %s1893_s29  ;;  %v1599_v3 = vpop.f32.mrb[8].mxu1 }
 0x28b   : > { %1133 = vst.msk [vmem:[%s2584_s15 + $0x80] sm:$0xff] %vm293_vm0, %v1007_v23  ;;  %v1092_v27 = vadd.f32 %v1599_v3, %v2580_v5  ;;  %1205 = vrot.lane.b32.xlu0 %v1007_v23, %s1893_s29  ;;  %v1086_v32 = vpop.f32.mrb[9].mxu1 }
 0x28c   : > { %v1087_v35 = vadd.f32 %v2580_v5, %v1086_v32 }
 0x28d   : > { %1150 = vst.msk [vmem:[%s2584_s15 + $0x190] sm:$0xff] %vm293_vm0, %v1092_v27 }
 0x28e   : > { %1149 = vst.msk [vmem:[%s2584_s15 + $0x180] sm:$0xff] %vm293_vm0, %v1087_v35  ;;  %1207 = vrot.lane.b32.xlu1 %v1012_v56, %s1893_s29 }
 0x28f   : > { %1237 = vrot.lane.b32.xlu0 %v1087_v35, %s1893_s29  ;;  %v1578_v39 = vpop.f32.mrb[10].mxu0 }
 0x290   : > { %v1022_v13 = vadd.f32 %v1578_v39, %v2580_v5  ;;  %v1016_v42 = vpop.f32.mrb[11].mxu0 }
 0x291   : > { %v1017_v0 = vadd.f32 %v2580_v5, %v1016_v42 }
 0x292   : > { %1136 = vst.msk [vmem:[%s2584_s15 + $0xb0] sm:$0xff] %vm293_vm0, %v1022_v13  ;;  %1239 = vrot.lane.b32.xlu1 %v1092_v27, %s1893_s29  ;;  %v1602_v60 = vpop.f32.mrb[10].mxu1 }
 0x293   : > { %1135 = vst.msk [vmem:[%s2584_s15 + $0xa0] sm:$0xff] %vm293_vm0, %v1017_v0  ;;  %v1102_v45 = vadd.f32 %v1602_v60, %v2580_v5  ;;  %1209 = vrot.lane.b32.xlu0 %v1017_v0, %s1893_s29  ;;  %v1096_v1 = vpop.f32.mrb[11].mxu1 }
 0x294   : > { %v1097_v24 = vadd.f32 %v2580_v5, %v1096_v1 }
 0x295   : > { %1152 = vst.msk [vmem:[%s2584_s15 + $0x1b0] sm:$0xff] %vm293_vm0, %v1102_v45 }
 0x296   : > { %1151 = vst.msk [vmem:[%s2584_s15 + $0x1a0] sm:$0xff] %vm293_vm0, %v1097_v24  ;;  %1211 = vrot.lane.b32.xlu1 %v1022_v13, %s1893_s29 }
 0x297   : > { %1241 = vrot.lane.b32.xlu0 %v1097_v24, %s1893_s29  ;;  %v1581_v61 = vpop.f32.mrb[12].mxu0 }
 0x298   : > { %v1032_v2 = vadd.f32 %v1581_v61, %v2580_v5  ;;  %v1026_v44 = vpop.f32.mrb[13].mxu0 }
 0x299   : > { %v1027_v33 = vadd.f32 %v2580_v5, %v1026_v44 }
 0x29a   : > { %1138 = vst.msk [vmem:[%s2584_s15 + $0xd0] sm:$0xff] %vm293_vm0, %v1032_v2  ;;  %1243 = vrot.lane.b32.xlu1 %v1102_v45, %s1893_s29  ;;  %v1605_v20 = vpop.f32.mrb[12].mxu1 }
 0x29b   : > { %1137 = vst.msk [vmem:[%s2584_s15 + $0xc0] sm:$0xff] %vm293_vm0, %v1027_v33  ;;  %v1112_v49 = vadd.f32 %v1605_v20, %v2580_v5  ;;  %1213 = vrot.lane.b32.xlu0 %v1027_v33, %s1893_s29  ;;  %v1106_v16 = vpop.f32.mrb[13].mxu1 }
 0x29c   : > { %v1107_v15 = vadd.f32 %v2580_v5, %v1106_v16 }
 0x29d   : > { %1154 = vst.msk [vmem:[%s2584_s15 + $0x1d0] sm:$0xff] %vm293_vm0, %v1112_v49 }
 0x29e   : > { %1153 = vst.msk [vmem:[%s2584_s15 + $0x1c0] sm:$0xff] %vm293_vm0, %v1107_v15  ;;  %1215 = vrot.lane.b32.xlu1 %v1032_v2, %s1893_s29 }
 0x29f   : > { %1245 = vrot.lane.b32.xlu0 %v1107_v15, %s1893_s29  ;;  %v1584_v46 = vpop.f32.mrb[14].mxu0 }
 0x2a0   : > { %v1042_v10 = vadd.f32 %v1584_v46, %v2580_v5  ;;  %v1036_v47 = vpop.f32.mrb[15].mxu0 }
 0x2a1   : > { %v1037_v51 = vadd.f32 %v2580_v5, %v1036_v47 }
 0x2a2   : > { %1140 = vst.msk [vmem:[%s2584_s15 + $0xf0] sm:$0xff] %vm293_vm0, %v1042_v10  ;;  %1247 = vrot.lane.b32.xlu1 %v1112_v49, %s1893_s29  ;;  %v1608_v53 = vpop.f32.mrb[14].mxu1 }
 0x2a3   : > { %1139 = vst.msk [vmem:[%s2584_s15 + $0xe0] sm:$0xff] %vm293_vm0, %v1037_v51  ;;  %v1122_v54 = vadd.f32 %v1608_v53, %v2580_v5  ;;  %1217 = vrot.lane.b32.xlu0 %v1037_v51, %s1893_s29  ;;  %v1116_v31 = vpop.f32.mrb[15].mxu1 }
 0x2a4   : > { %v1117_v17 = vadd.f32 %v2580_v5, %v1116_v31 }
 0x2a5   : > { %1156 = vst.msk [vmem:[%s2584_s15 + $0x1f0] sm:$0xff] %vm293_vm0, %v1122_v54 }
 0x2a6   : > { %1155 = vst.msk [vmem:[%s2584_s15 + $0x1e0] sm:$0xff] %vm293_vm0, %v1117_v17  ;;  %1219 = vrot.lane.b32.xlu1 %v1042_v10, %s1893_s29 }
 0x2a7   : > { %1249 = vrot.lane.b32.xlu0 %v1117_v17, %s1893_s29 }
 0x2aa   : > { %1251 = vrot.lane.b32.xlu1 %v1122_v54, %s1893_s29 }
 0x2dc   : > { %v1192_v57 = vpop.permute.xlu1 %1191 }
 0x2dd   : > { %1464 = vst.msk [vmem:[%s2584_s15 + $0x18] sm:$0xff] %vm293_vm0, %v1192_v57  ;;  %v1190_v8 = vpop.permute.xlu0 %1189 }
 0x2de   : > { %1463 = vst.msk [vmem:[%s2584_s15 + $0x8] sm:$0xff] %vm293_vm0, %v1190_v8 }
 0x2e0   : > { %v1224_v5 = vpop.permute.xlu1 %1223 }
 0x2e1   : > { %1480 = vst.msk [vmem:[%s2584_s15 + $0x118] sm:$0xff] %vm293_vm0, %v1224_v5  ;;  %v1222_v58 = vpop.permute.xlu0 %1221 }
 0x2e2   : > { %1479 = vst.msk [vmem:[%s2584_s15 + $0x108] sm:$0xff] %vm293_vm0, %v1222_v58 }
 0x2e4   : > { %v1196_v22 = vpop.permute.xlu1 %1195 }
 0x2e5   : > { %1466 = vst.msk [vmem:[%s2584_s15 + $0x38] sm:$0xff] %vm293_vm0, %v1196_v22 }
 0x2e8   : > { %v1228_v38 = vpop.permute.xlu1 %1227  ;;  %v1226_v55 = vpop.permute.xlu0 %1225 }
 0x2e9   : > { %1482 = vst.msk [vmem:[%s2584_s15 + $0x138] sm:$0xff] %vm293_vm0, %v1228_v38  ;;  %1481 = vst.msk [vmem:[%s2584_s15 + $0x128] sm:$0xff] %vm293_vm0, %v1226_v55 }
 0x2ec   : > { %v1194_v48 = vpop.permute.xlu1 %1193 }
 0x2ed   : > { %1465 = vst.msk [vmem:[%s2584_s15 + $0x28] sm:$0xff] %vm293_vm0, %v1194_v48  ;;  %v1198_v59 = vpop.permute.xlu0 %1197 }
 0x2ee   : > { %1467 = vst.msk [vmem:[%s2584_s15 + $0x48] sm:$0xff] %vm293_vm0, %v1198_v59 }
 0x2f0   : > { %v1200_v43 = vpop.permute.xlu1 %1199 }
 0x2f1   : > { %1468 = vst.msk [vmem:[%s2584_s15 + $0x58] sm:$0xff] %vm293_vm0, %v1200_v43  ;;  %v1230_v50 = vpop.permute.xlu0 %1229 }
 0x2f2   : > { %1483 = vst.msk [vmem:[%s2584_s15 + $0x148] sm:$0xff] %vm293_vm0, %v1230_v50 }
 0x2f4   : > { %v1232_v62 = vpop.permute.xlu1 %1231 }
 0x2f5   : > { %1484 = vst.msk [vmem:[%s2584_s15 + $0x158] sm:$0xff] %vm293_vm0, %v1232_v62  ;;  %v1202_v36 = vpop.permute.xlu0 %1201 }
 0x2f6   : > { %1469 = vst.msk [vmem:[%s2584_s15 + $0x68] sm:$0xff] %vm293_vm0, %v1202_v36 }
 0x2f8   : > { %v1204_v37 = vpop.permute.xlu1 %1203 }
 0x2f9   : > { %1470 = vst.msk [vmem:[%s2584_s15 + $0x78] sm:$0xff] %vm293_vm0, %v1204_v37  ;;  %v1234_v25 = vpop.permute.xlu0 %1233 }
 0x2fa   : > { %1485 = vst.msk [vmem:[%s2584_s15 + $0x168] sm:$0xff] %vm293_vm0, %v1234_v25 }
 0x2fc   : > { %v1236_v4 = vpop.permute.xlu1 %1235 }
 0x2fd   : > { %1486 = vst.msk [vmem:[%s2584_s15 + $0x178] sm:$0xff] %vm293_vm0, %v1236_v4  ;;  %v1206_v6 = vpop.permute.xlu0 %1205 }
 0x2fe   : > { %1471 = vst.msk [vmem:[%s2584_s15 + $0x88] sm:$0xff] %vm293_vm0, %v1206_v6 }
 0x300   : > { %v1208_v26 = vpop.permute.xlu1 %1207 }
 0x301   : > { %1472 = vst.msk [vmem:[%s2584_s15 + $0x98] sm:$0xff] %vm293_vm0, %v1208_v26  ;;  %v1238_v14 = vpop.permute.xlu0 %1237 }
 0x302   : > { %1487 = vst.msk [vmem:[%s2584_s15 + $0x188] sm:$0xff] %vm293_vm0, %v1238_v14 }
 0x304   : > { %v1240_v21 = vpop.permute.xlu1 %1239 }
 0x305   : > { %1488 = vst.msk [vmem:[%s2584_s15 + $0x198] sm:$0xff] %vm293_vm0, %v1240_v21  ;;  %v1210_v52 = vpop.permute.xlu0 %1209 }
 0x306   : > { %1473 = vst.msk [vmem:[%s2584_s15 + $0xa8] sm:$0xff] %vm293_vm0, %v1210_v52 }
 0x308   : > { %v1212_v9 = vpop.permute.xlu1 %1211 }
 0x309   : > { %1474 = vst.msk [vmem:[%s2584_s15 + $0xb8] sm:$0xff] %vm293_vm0, %v1212_v9  ;;  %v1242_v63 = vpop.permute.xlu0 %1241 }
 0x30a   : > { %1489 = vst.msk [vmem:[%s2584_s15 + $0x1a8] sm:$0xff] %vm293_vm0, %v1242_v63 }
 0x30c   : > { %v1244_v11 = vpop.permute.xlu1 %1243 }
 0x30d   : > { %1490 = vst.msk [vmem:[%s2584_s15 + $0x1b8] sm:$0xff] %vm293_vm0, %v1244_v11  ;;  %v1214_v12 = vpop.permute.xlu0 %1213 }
 0x30e   : > { %1475 = vst.msk [vmem:[%s2584_s15 + $0xc8] sm:$0xff] %vm293_vm0, %v1214_v12 }
 0x310   : > { %v1216_v18 = vpop.permute.xlu1 %1215 }
 0x311   : > { %1476 = vst.msk [vmem:[%s2584_s15 + $0xd8] sm:$0xff] %vm293_vm0, %v1216_v18  ;;  %v1246_v41 = vpop.permute.xlu0 %1245 }
 0x312   : > { %1491 = vst.msk [vmem:[%s2584_s15 + $0x1c8] sm:$0xff] %vm293_vm0, %v1246_v41 }
 0x314   : > { %v1248_v19 = vpop.permute.xlu1 %1247 }
 0x315   : > { %1492 = vst.msk [vmem:[%s2584_s15 + $0x1d8] sm:$0xff] %vm293_vm0, %v1248_v19  ;;  %v1218_v28 = vpop.permute.xlu0 %1217 }
 0x316   : > { %1477 = vst.msk [vmem:[%s2584_s15 + $0xe8] sm:$0xff] %vm293_vm0, %v1218_v28 }
 0x318   : > { %v1220_v29 = vpop.permute.xlu1 %1219 }
 0x319   : > { %1478 = vst.msk [vmem:[%s2584_s15 + $0xf8] sm:$0xff] %vm293_vm0, %v1220_v29  ;;  %v1250_v7 = vpop.permute.xlu0 %1249 }
 0x31a   : > { %1493 = vst.msk [vmem:[%s2584_s15 + $0x1e8] sm:$0xff] %vm293_vm0, %v1250_v7 }
 0x31c   : > { %v1252_v40 = vpop.permute.xlu1 %1251 }
 0x31d   : > { %1494 = vst.msk [vmem:[%s2584_s15 + $0x1f8] sm:$0xff] %vm293_vm0, %v1252_v40 }
 0x31e   : > { %1830 = shalt.err (!%p1827_p7)
}
 0x31f   : > { %s1831_s17 = scalar_lea.hbm %s2779_s12, 8192  ;;  %s1835_s7 = scalar_lea.hbm %s2832_s5, 16384 }
 0x320   : > { %p1832_p9 = scmp.ne.s32.totalorder %s2779_s12, %s1831_s17  ;;  %p1836_p5 = scmp.lt.u32.totalorder %s2779_s12, %s2832_s5 }
 0x321   : > { %p1837_p11 = scmp.lt.u32.totalorder %s1835_s7, %s1831_s17  ;;  %p1839_p4 = scmp.lt.u32.totalorder %s1831_s17, %s2779_s12 }
 0x322   : > { %p1833_p1 = pnand %p1832_p9, %p2021_p12 }
 0x323   : > { %p1838_p2 = por %p1837_p11, %p1836_p5 }
 0x324   : > { %p1834_p0 = pneg %p1833_p1 }
 0x325   : > { %p1840_p6 = por %p1839_p4, %p1838_p2 }
 0x327   : > { %p1841_p8 = pnand %p1840_p6, %p1834_p0 }
 0x329   : > { %1844 = shalt.err (!%p1841_p8)
}
 0x32a   : > { %s1895_s28 = smov 128   ;;  %s1896_s10 = smov 8  }
 0x32b   : > { %1639 = dma.vmem_to_hbm [thread:$0]  (%p2021_p12), %s2781_s27, 8192, %s2779_s12, %s1319_s22, %s1895_s28, %s1895_s28, %s1896_s10  }
 0x32c PF: > { %s1348_s11 = sand.u32 1, %s1875_s18   ;;  %p2847_p10 = scmp.ne.s32.totalorder %s2837_s25, 0 }
 0x32d   : > { %p2848_p13 = scmp.ge.s32.totalorder %s1887_s21, 2  ;;  %s1349_s13 = scalar_lea.sflag [#allocation4], %s1348_s11 }
 0x32f   : > { %p1650_p3 = pnand %p2848_p13, %p2847_p10 }
 0x331   : > { %1870 = dma.done.wait (!%p1650_p3), %s1349_s13, 8192  }
 0x332   : > { %1872 = vsyncadd (!%p1650_p3), %s1349_s13, 4294959104  ;;  %p19_p7 = scmp.ge.s32.totalorder %s1983_s30, 4   ;;  %s2849_s18 = smov %s1879_s19 }
 0x333   : > { %s2850_s19 = smov %s1883_s20  ;;  %s2851_s20 = smov %s2017_s8 }
 0x334   : > { %s2852_s21 = smov %s1983_s30  ;;  %21 = sbr.rel (!%p19_p7) target bundleno = 6 (0x6), region = 90 }
 0x33b   :  { %1354 = vsyncpa [#allocation3], 1 }
 0x33c   :  { %1356 = vsyncpa [#allocation3 + $0x1], 1 }
 0x33d   :  { %1357 = vsyncpa [#allocation6], 1 }
 0x33e   :  { %1358 = vsyncpa [#allocation4], 1 }
 0x33f   :  { %1360 = vsyncpa [#allocation4 + $0x1], 1 }

</bundles_post_ra>
